<compile_context>
chip_gen: v5e
topology: v5e:2x2
jax: 0.10.0
libtpu: 0.0.40
codegen_flags: <defaults>
</compile_context>

<pallas_src>
import math
from functools import partial

import jax
import jax.numpy as jnp
from jax.experimental import pallas as pl
from jax.experimental.pallas import tpu as pltpu


# ----------------------------------------------------------------------------
# Kernel
# ----------------------------------------------------------------------------
def encoder_block_kernel(x_ref,
                         wq_ref, wk_ref, wv_ref, bq_ref, bk_ref, bv_ref,
                         wo_ref, bo_ref, g1_ref, be1_ref,
                         w1_ref, b1_ref, w2_ref, b2_ref, g2_ref, be2_ref,
                         o_ref,
                         k_scr, v_scr,
                         *, num_heads, tq, kv_tile, eps=1e-5):
    qi = pl.program_id(1)
    S, D = x_ref.shape
    TQ = tq
    H = num_heads
    hd = D // H
    scale = 1.0 / math.sqrt(hd)

    # ---- K/V projection for the full sequence, once per batch element ------
    # Stored head-major (H, S, hd); the head relayout is amortized over all
    # query tiles (static per-head slice copies, no per-step transposes).
    @pl.when(qi == 0)
    def _():
        xf = x_ref[...].astype(jnp.bfloat16)
        k_full = jnp.dot(xf, wk_ref[...],
                         preferred_element_type=jnp.float32) + bk_ref[...]
        v_full = jnp.dot(xf, wv_ref[...],
                         preferred_element_type=jnp.float32) + bv_ref[...]
        kb = k_full.astype(jnp.bfloat16)
        vb = v_full.astype(jnp.bfloat16)
        for h in range(H):                       # static unroll (H is small)
            k_scr[h] = kb[:, h * hd:(h + 1) * hd]
            v_scr[h] = vb[:, h * hd:(h + 1) * hd]

    # ---- residual / query rows sliced from the single full-S view ----------
    row0 = pl.multiple_of(qi * TQ, TQ)
    x = x_ref[pl.ds(row0, TQ), :]                # (TQ, D) f32, kept for residual
    xb = x.astype(jnp.bfloat16)

    # ---- queries for this tile (softmax scale folded into Q once) ----------
    q = jnp.dot(xb, wq_ref[...], preferred_element_type=jnp.float32) + bq_ref[...]
    q = jnp.transpose((q * scale).reshape(TQ, H, hd), (1, 0, 2))   # (H, TQ, hd) f32
    q = q.astype(jnp.bfloat16)

    # ---- attention (head-batched, batch dim leading) ------------------------
    if kv_tile is None or kv_tile >= S:
        # Full (H, TQ, S) logits fit comfortably in VMEM.
        k = k_scr[...]                                              # (H, S, hd)
        v = v_scr[...]
        logits = jnp.einsum('hqd,hkd->hqk', q, k,
                            preferred_element_type=jnp.float32)     # (H, TQ, S)
        m = jnp.max(logits, axis=-1, keepdims=True)
        p = jnp.exp(logits - m)
        denom = jnp.sum(p, axis=-1, keepdims=True)
        attn = (p * pl.reciprocal(denom, approx=True)).astype(jnp.bfloat16)
        vals = jnp.einsum('hqk,hkd->hqd', attn, v,
                          preferred_element_type=jnp.float32)       # (H, TQ, hd)
    else:
        # Online-softmax (flash-style) over KV chunks: bounds live attention
        # slabs to (H, TQ, kv_tile) regardless of S.
        n_kv = S // kv_tile

        def body(t, carry):
            m_i, l_i, acc = carry
            k0 = pl.multiple_of(t * kv_tile, kv_tile)
            kc = k_scr[:, pl.ds(k0, kv_tile), :]                    # (H, TK, hd)
            vc = v_scr[:, pl.ds(k0, kv_tile), :]
            s = jnp.einsum('hqd,hkd->hqk', q, kc,
                           preferred_element_type=jnp.float32)
            m_new = jnp.maximum(m_i, jnp.max(s, axis=-1, keepdims=True))
            alpha = jnp.exp(m_i - m_new)
            p = jnp.exp(s - m_new)
            l_new = alpha * l_i + jnp.sum(p, axis=-1, keepdims=True)
            acc_new = alpha * acc + jnp.einsum(
                'hqk,hkd->hqd', p.astype(jnp.bfloat16), vc,
                preferred_element_type=jnp.float32)
            return m_new, l_new, acc_new

        m0 = jnp.full((H, TQ, 1), -jnp.inf, jnp.float32)
        l0 = jnp.zeros((H, TQ, 1), jnp.float32)
        a0 = jnp.zeros((H, TQ, hd), jnp.float32)
        _, l_f, acc_f = jax.lax.fori_loop(0, n_kv, body, (m0, l0, a0))
        vals = acc_f * pl.reciprocal(l_f, approx=True)              # (H, TQ, hd)

    vals = jnp.transpose(vals, (1, 0, 2)).reshape(TQ, D)            # head-major cols
    attn_out = jnp.dot(vals.astype(jnp.bfloat16), wo_ref[...],
                       preferred_element_type=jnp.float32) + bo_ref[...]

    # ---- residual + LayerNorm 1 (f32) ---------------------------------------
    x1 = x + attn_out
    mu = jnp.mean(x1, axis=-1, keepdims=True)
    var = jnp.mean((x1 - mu) ** 2, axis=-1, keepdims=True)
    x1 = (x1 - mu) * jax.lax.rsqrt(var + eps) * g1_ref[...] + be1_ref[...]

    # ---- feed-forward: Linear -> ReLU -> Linear (bf16 matmuls, f32 acc) -----
    hdn = jnp.dot(x1.astype(jnp.bfloat16), w1_ref[...],
                  preferred_element_type=jnp.float32) + b1_ref[...]
    hdn = jnp.maximum(hdn, 0.0)
    ffn = jnp.dot(hdn.astype(jnp.bfloat16), w2_ref[...],
                  preferred_element_type=jnp.float32) + b2_ref[...]

    # ---- residual + LayerNorm 2 (f32) ---------------------------------------
    x2 = x1 + ffn
    mu2 = jnp.mean(x2, axis=-1, keepdims=True)
    var2 = jnp.mean((x2 - mu2) ** 2, axis=-1, keepdims=True)
    o_ref[...] = (x2 - mu2) * jax.lax.rsqrt(var2 + eps) * g2_ref[...] + be2_ref[...]


# ----------------------------------------------------------------------------
# Host-side sizing helpers
# ----------------------------------------------------------------------------
def _vmem_capacity_bytes():
    try:
        return int(pltpu.get_tpu_info().vmem_capacity_bytes)
    except Exception:
        pass
    try:
        kind = jax.devices()[0].device_kind.lower()
        if "v7" in kind:
            return 64 * 1024 * 1024
    except Exception:
        pass
    return 128 * 1024 * 1024


def _preferred_tq():
    # 256x256 MXU on v6e/v7x likes M=256; v5e (128-wide MXU) keeps 128.
    try:
        kind = jax.devices()[0].device_kind.lower()
        if "v6" in kind or "v7" in kind:
            return 256
    except Exception:
        pass
    return 128


def _pick_tq(S, pref):
    if S <= pref:
        return S
    for t in range(pref, 7, -8):        # largest multiple-of-8 divisor <= pref
        if S % t == 0:
            return t
    # TODO(synk): truly ragged S (no multiple-of-8 divisor) would need a
    # masked tail tile; fall back to a single full-S tile.
    return S


def _pick_kv_tile(S, H, TQ):
    if H * TQ * S * 4 <= (2 << 20):     # full logits slab is small enough
        return None
    for tk in (1024, 512, 256, 128):
        if tk < S and S % tk == 0:
            return tk
    return None


def _vmem_limit_bytes(S, D, F, TQ, H, kv_tile):
    bf, f32 = 2, 4
    hd = D // H
    kspan = S if kv_tile is None else kv_tile
    est = (2 * S * D * f32                 # full-S x block (double-buffered)
           + 2 * TQ * D * f32              # output tile (double-buffered)
           + (4 * D * D + 2 * D * F) * bf  # weights (single-buffered)
           + (8 * D + 2 * F) * f32         # biases / LN params
           + 2 * S * D * bf                # K/V scratch (head-major)
           + 3 * H * TQ * kspan * f32      # logits / p / attn slabs
           + 2 * H * TQ * hd * f32         # q / vals
           + 2 * TQ * F * f32              # FFN hidden
           + 4 * TQ * D * f32)             # residual / LN temporaries
    cap = _vmem_capacity_bytes()
    return max(32 * 1024 * 1024,
               min(int(cap * 0.80), int(est * 1.5) + (4 << 20)))


# ----------------------------------------------------------------------------
# pallas_call wrapper
# ----------------------------------------------------------------------------
def _encoder_block(x, kernel_params, num_heads, *, kv_tile, single_buffer_weights):
    B, S, D = x.shape
    (wq, wk, wv, bq, bk, bv, wo, bo,
     g1, be1, w1, b1, w2, b2, g2, be2) = kernel_params
    F = w1.shape[1]
    H = num_heads
    hd = D // H

    TQ = _pick_tq(S, _preferred_tq())
    n_q = S // TQ

    if kv_tile == "auto":
        kv_tile = _pick_kv_tile(S, H, TQ)
    if kv_tile is not None and (S % kv_tile != 0 or kv_tile >= S):
        kv_tile = None

    def rep(a):
        idx = lambda b, qi, _nd=a.ndim: (0,) * _nd
        if single_buffer_weights:
            # Constant-index blocks never change: single-buffering halves the
            # resident weight footprint at zero steady-state cost.
            return pl.BlockSpec(a.shape, idx, pipeline_mode=pl.Buffered(1))
        return pl.BlockSpec(a.shape, idx)

    flops = B * (8 * S * D * D + 4 * S * S * D + 4 * S * D * F)
    transcendentals = B * (H * S * S + H * S + 2 * S)
    bytes_accessed = (2 * B * S * D * 4                  # x (single view) + out
                      + (4 * D * D + 2 * D * F) * 2      # bf16 weights
                      + (8 * D + 2 * F) * 4)             # biases / LN params

    return pl.pallas_call(
        partial(encoder_block_kernel, num_heads=H, tq=TQ, kv_tile=kv_tile),
        out_shape=jax.ShapeDtypeStruct((B, S, D), jnp.float32),
        grid=(B, n_q),
        in_specs=[
            # single full-sequence view of x (K/V source + residual/Q rows);
            # same block across all q-tiles -> DMA'd once per batch element.
            pl.BlockSpec((None, S, D), lambda b, qi: (b, 0, 0)),
            rep(wq), rep(wk), rep(wv), rep(bq), rep(bk), rep(bv),
            rep(wo), rep(bo), rep(g1), rep(be1),
            rep(w1), rep(b1), rep(w2), rep(b2), rep(g2), rep(be2),
        ],
        out_specs=pl.BlockSpec((None, TQ, D), lambda b, qi: (b, qi, 0)),
        scratch_shapes=[
            pltpu.VMEM((H, S, hd), jnp.bfloat16),   # K cache, head-major
            pltpu.VMEM((H, S, hd), jnp.bfloat16),   # V cache, head-major
        ],
        compiler_params=pltpu.CompilerParams(
            dimension_semantics=("parallel", "arbitrary"),
            vmem_limit_bytes=_vmem_limit_bytes(S, D, F, TQ, H, kv_tile),
        ),
        cost_estimate=pl.CostEstimate(
            flops=int(flops),
            transcendentals=int(transcendentals),
            bytes_accessed=int(bytes_accessed)),
    )(x, wq, wk, wv, bq, bk, bv, wo, bo, g1, be1, w1, b1, w2, b2, g2, be2)


def encoder_block(x, kernel_params, num_heads, *, kv_tile="auto"):
    """x: (B, S, D) f32; kernel_params from prepare_params()."""
    try:
        return _encoder_block(x, kernel_params, num_heads, kv_tile=kv_tile,
                              single_buffer_weights=True)
    except Exception:
        # Fallback for runtimes where pl.Buffered(1) on constant-index weight
        # blocks is unavailable: identical math, default double-buffering.
        return _encoder_block(x, kernel_params, num_heads, kv_tile=kv_tile,
                              single_buffer_weights=False)


# ----------------------------------------------------------------------------
# Parameter prep / init / reference
# ----------------------------------------------------------------------------
def prepare_params(params, num_heads):
    """Re-pack original (PyTorch-style) params into kernel layout: head-major
    Wq/Wk/Wv split out of the fused qkv projection, matmul weights cast to
    bf16, biases / LayerNorm params kept in f32."""
    (wqkv, bqkv, wo, bo, g1, be1, w1, b1, w2, b2, g2, be2) = params
    D = wqkv.shape[0]
    hd = D // num_heads
    bf = jnp.bfloat16

    w3 = wqkv.reshape(D, num_heads, 3, hd)     # columns: [head h | q,k,v | hd]
    b3 = bqkv.reshape(1, num_heads, 3, hd)
    wq = w3[:, :, 0, :].reshape(D, D).astype(bf)
    wk = w3[:, :, 1, :].reshape(D, D).astype(bf)
    wv = w3[:, :, 2, :].reshape(D, D).astype(bf)
    bq = b3[:, :, 0, :].reshape(1, D)
    bk = b3[:, :, 1, :].reshape(1, D)
    bv = b3[:, :, 2, :].reshape(1, D)

    # TODO(synk): optionally zero-pad head_dim to 128 here (lane-dense heads on
    # v6e/v7x) -- measure-first change, skipped.
    return (wq, wk, wv, bq, bk, bv,
            wo.astype(bf), bo, g1, be1,
            w1.astype(bf), b1, w2.astype(bf), b2, g2, be2)


def init_params(key, input_dim, dim_feedforward):
    """Parameter init mirroring the PyTorch module (original fused-qkv layout)."""
    k1, k2, k3, k4, k5, k6 = jax.random.split(key, 6)
    D, F = input_dim, dim_feedforward

    def xavier_uniform(k, fan_in, fan_out):
        bound = math.sqrt(6.0 / (fan_in + fan_out))
        return jax.random.uniform(k, (fan_in, fan_out), jnp.float32, -bound, bound)

    def torch_linear_w(k, fan_in, fan_out):
        bound = 1.0 / math.sqrt(fan_in)
        return jax.random.uniform(k, (fan_in, fan_out), jnp.float32, -bound, bound)

    def torch_linear_b(k, fan_in, n):
        bound = 1.0 / math.sqrt(fan_in)
        return jax.random.uniform(k, (1, n), jnp.float32, -bound, bound)

    wqkv = xavier_uniform(k1, D, 3 * D)
    bqkv = jnp.zeros((1, 3 * D), jnp.float32)       # qkv bias filled with 0
    wo = xavier_uniform(k2, D, D)
    bo = jnp.zeros((1, D), jnp.float32)             # o bias filled with 0
    w1 = torch_linear_w(k3, D, F)
    b1 = torch_linear_b(k4, D, F)
    w2 = torch_linear_w(k5, F, D)
    b2 = torch_linear_b(k6, F, D)
    g1 = jnp.ones((1, D), jnp.float32)
    be1 = jnp.zeros((1, D), jnp.float32)
    g2 = jnp.ones((1, D), jnp.float32)
    be2 = jnp.zeros((1, D), jnp.float32)
    return (wqkv, bqkv, wo, bo, g1, be1, w1, b1, w2, b2, g2, be2)


def reference_encoder_block(x, params, num_heads, eps=1e-5):
    """Plain-JAX (f32) reference mirroring the PyTorch forward exactly."""
    (wqkv, bqkv, wo, bo, g1, be1, w1, b1, w2, b2, g2, be2) = params
    B, S, D = x.shape
    hd = D // num_heads

    qkv = x @ wqkv + bqkv[0]                                # (B, S, 3D)
    qkv = qkv.reshape(B, S, num_heads, 3 * hd).transpose(0, 2, 1, 3)
    q, k, v = jnp.split(qkv, 3, axis=-1)                    # (B, H, S, hd)
    logits = jnp.einsum("bhqd,bhkd->bhqk", q, k) / math.sqrt(hd)
    attn = jax.nn.softmax(logits, axis=-1)
    vals = jnp.einsum("bhqk,bhkd->bhqd", attn, v)
    vals = vals.transpose(0, 2, 1, 3).reshape(B, S, D)
    attn_out = vals @ wo + bo[0]

    def ln(z, g, b):
        mu = jnp.mean(z, -1, keepdims=True)
        var = jnp.mean((z - mu) ** 2, -1, keepdims=True)
        return (z - mu) * jax.lax.rsqrt(var + eps) * g[0] + b[0]

    x1 = ln(x + attn_out, g1, be1)
    ffn = jnp.maximum(x1 @ w1 + b1[0], 0.0) @ w2 + b2[0]
    return ln(x1 + ffn, g2, be2)


if __name__ == "__main__":
    B, S, D = 2, 8, 32        # batch, seq_len, embed_dim (input_dim)
    num_heads = 4
    dim_feedforward = 64

    key = jax.random.PRNGKey(0)
    kx, kp, kx2 = jax.random.split(key, 3)
    x = jax.random.normal(kx, (B, S, D), jnp.float32)
    params = init_params(kp, D, dim_feedforward)
    kparams = prepare_params(params, num_heads)

    # ---- small-shape test: full-logits attention path ----
    out = jax.block_until_ready(encoder_block(x, kparams, num_heads))
    ref = reference_encoder_block(x, params, num_heads)
    assert out.shape == (B, S, D)
    max_err = float(jnp.max(jnp.abs(out - ref)))
    # bf16 MXU operands + approx reciprocal vs pure-f32 reference -> bf16-level tolerance.
    assert jnp.allclose(out, ref, atol=3e-2, rtol=3e-2), \
        f"mismatch vs reference (max abs err {max_err})"

    # ---- longer-sequence test: force the KV-tiled online-softmax path ----
    x2 = jax.random.normal(kx2, (1, 256, D), jnp.float32)
    out2 = jax.block_until_ready(encoder_block(x2, kparams, num_heads, kv_tile=128))
    ref2 = reference_encoder_block(x2, params, num_heads)
    max_err2 = float(jnp.max(jnp.abs(out2 - ref2)))
    assert jnp.allclose(out2, ref2, atol=5e-2, rtol=5e-2), \
        f"flash-path mismatch vs reference (max abs err {max_err2})"

    print("KERNEL_OK")
</pallas_src>

<mosaic_0001>
module attributes {stable_mosaic.version = 11 : i64} {
  func.func @encoder_block_kernel(%arg0: i32, %arg1: i32, %arg2: memref<1x8x32xf32, #tpu.memory_space<vmem>>, %arg3: memref<32x32xbf16, #tpu.memory_space<vmem>>, %arg4: memref<32x32xbf16, #tpu.memory_space<vmem>>, %arg5: memref<32x32xbf16, #tpu.memory_space<vmem>>, %arg6: memref<1x32xf32, #tpu.memory_space<vmem>>, %arg7: memref<1x32xf32, #tpu.memory_space<vmem>>, %arg8: memref<1x32xf32, #tpu.memory_space<vmem>>, %arg9: memref<32x32xbf16, #tpu.memory_space<vmem>>, %arg10: memref<1x32xf32, #tpu.memory_space<vmem>>, %arg11: memref<1x32xf32, #tpu.memory_space<vmem>>, %arg12: memref<1x32xf32, #tpu.memory_space<vmem>>, %arg13: memref<32x64xbf16, #tpu.memory_space<vmem>>, %arg14: memref<1x64xf32, #tpu.memory_space<vmem>>, %arg15: memref<64x32xbf16, #tpu.memory_space<vmem>>, %arg16: memref<1x32xf32, #tpu.memory_space<vmem>>, %arg17: memref<1x32xf32, #tpu.memory_space<vmem>>, %arg18: memref<1x32xf32, #tpu.memory_space<vmem>>, %arg19: memref<1x8x32xf32, #tpu.memory_space<vmem>>, %arg20: memref<4x8x8xbf16, #tpu.memory_space<vmem>>, %arg21: memref<4x8x8xbf16, #tpu.memory_space<vmem>>) attributes {dimension_semantics = [#tpu.dimension_semantics<parallel>, #tpu.dimension_semantics<arbitrary>], iteration_bounds = array<i64: 2, 1>, scalar_prefetch = 0 : i64, scratch_operands = 2 : i64, tpu.core_type = #tpu.core_type<tc>, window_params = [{transform_indices = @transform_0, window_bounds = array<i64: 1, 8, 32>}, {pipeline_mode = #tpu.pipeline_mode<synchronous>, transform_indices = @transform_1, window_bounds = array<i64: 32, 32>}, {pipeline_mode = #tpu.pipeline_mode<synchronous>, transform_indices = @transform_2, window_bounds = array<i64: 32, 32>}, {pipeline_mode = #tpu.pipeline_mode<synchronous>, transform_indices = @transform_3, window_bounds = array<i64: 32, 32>}, {pipeline_mode = #tpu.pipeline_mode<synchronous>, transform_indices = @transform_4, window_bounds = array<i64: 1, 32>}, {pipeline_mode = #tpu.pipeline_mode<synchronous>, transform_indices = @transform_5, window_bounds = array<i64: 1, 32>}, {pipeline_mode = #tpu.pipeline_mode<synchronous>, transform_indices = @transform_6, window_bounds = array<i64: 1, 32>}, {pipeline_mode = #tpu.pipeline_mode<synchronous>, transform_indices = @transform_7, window_bounds = array<i64: 32, 32>}, {pipeline_mode = #tpu.pipeline_mode<synchronous>, transform_indices = @transform_8, window_bounds = array<i64: 1, 32>}, {pipeline_mode = #tpu.pipeline_mode<synchronous>, transform_indices = @transform_9, window_bounds = array<i64: 1, 32>}, {pipeline_mode = #tpu.pipeline_mode<synchronous>, transform_indices = @transform_10, window_bounds = array<i64: 1, 32>}, {pipeline_mode = #tpu.pipeline_mode<synchronous>, transform_indices = @transform_11, window_bounds = array<i64: 32, 64>}, {pipeline_mode = #tpu.pipeline_mode<synchronous>, transform_indices = @transform_12, window_bounds = array<i64: 1, 64>}, {pipeline_mode = #tpu.pipeline_mode<synchronous>, transform_indices = @transform_13, window_bounds = array<i64: 64, 32>}, {pipeline_mode = #tpu.pipeline_mode<synchronous>, transform_indices = @transform_14, window_bounds = array<i64: 1, 32>}, {pipeline_mode = #tpu.pipeline_mode<synchronous>, transform_indices = @transform_15, window_bounds = array<i64: 1, 32>}, {pipeline_mode = #tpu.pipeline_mode<synchronous>, transform_indices = @transform_16, window_bounds = array<i64: 1, 32>}, {transform_indices = @transform_17, window_bounds = array<i64: 1, 8, 32>}]} {
    %c0_i32 = arith.constant 0 : i32
    %0 = arith.cmpi eq, %arg1, %c0_i32 : i32
    %1 = arith.extui %0 : i1 to i32
    %c0_i32_0 = arith.constant 0 : i32
    %2 = arith.cmpi ne, %1, %c0_i32_0 : i32
    scf.if %2 {
      %c0_54 = arith.constant 0 : index
      %c0_55 = arith.constant 0 : index
      %c0_56 = arith.constant 0 : index
      %109 = vector.load %arg2[%c0_54, %c0_55, %c0_56] : memref<1x8x32xf32, #tpu.memory_space<vmem>>, vector<1x8x32xf32>
      %110 = vector.shape_cast %109 : vector<1x8x32xf32> to vector<8x32xf32>
      %111 = arith.truncf %110 : vector<8x32xf32> to vector<8x32xbf16>
      %c0_57 = arith.constant 0 : index
      %c0_58 = arith.constant 0 : index
      %112 = vector.load %arg4[%c0_57, %c0_58] : memref<32x32xbf16, #tpu.memory_space<vmem>>, vector<32x32xbf16>
      %cst_59 = arith.constant dense<0.000000e+00> : vector<8x32xf32>
      %113 = tpu.matmul %111, %112, %cst_59 {dimension_numbers = #tpu.dot_dimension_numbers<[1], [0], [0], [1], [0, 0, 1, 1], [], []>} : vector<8x32xbf16>, vector<32x32xbf16>, vector<8x32xf32> -> vector<8x32xf32>
      %c0_60 = arith.constant 0 : index
      %c0_61 = arith.constant 0 : index
      %114 = vector.load %arg7[%c0_60, %c0_61] : memref<1x32xf32, #tpu.memory_space<vmem>>, vector<1x32xf32>
      %115 = vector.broadcast %114 : vector<1x32xf32> to vector<8x32xf32>
      %116 = arith.addf %113, %115 : vector<8x32xf32>
      %c0_62 = arith.constant 0 : index
      %c0_63 = arith.constant 0 : index
      %117 = vector.load %arg5[%c0_62, %c0_63] : memref<32x32xbf16, #tpu.memory_space<vmem>>, vector<32x32xbf16>
      %cst_64 = arith.constant dense<0.000000e+00> : vector<8x32xf32>
      %118 = tpu.matmul %111, %117, %cst_64 {dimension_numbers = #tpu.dot_dimension_numbers<[1], [0], [0], [1], [0, 0, 1, 1], [], []>} : vector<8x32xbf16>, vector<32x32xbf16>, vector<8x32xf32> -> vector<8x32xf32>
      %c0_65 = arith.constant 0 : index
      %c0_66 = arith.constant 0 : index
      %119 = vector.load %arg8[%c0_65, %c0_66] : memref<1x32xf32, #tpu.memory_space<vmem>>, vector<1x32xf32>
      %120 = vector.broadcast %119 : vector<1x32xf32> to vector<8x32xf32>
      %121 = arith.addf %118, %120 : vector<8x32xf32>
      %122 = arith.truncf %116 : vector<8x32xf32> to vector<8x32xbf16>
      %123 = arith.truncf %121 : vector<8x32xf32> to vector<8x32xbf16>
      %124 = vector.extract_strided_slice %122 {offsets = [0, 0], sizes = [8, 8], strides = [1, 1]} : vector<8x32xbf16> to vector<8x8xbf16>
      %c0_67 = arith.constant 0 : index
      %c0_68 = arith.constant 0 : index
      %c0_69 = arith.constant 0 : index
      %125 = vector.load %arg20[%c0_67, %c0_68, %c0_69] : memref<4x8x8xbf16, #tpu.memory_space<vmem>>, vector<1x8x8xbf16>
      %126 = vector.shape_cast %125 : vector<1x8x8xbf16> to vector<8x8xbf16>
      %127 = vector.shape_cast %124 : vector<8x8xbf16> to vector<1x8x8xbf16>
      tpu.vector_store %arg20[%c0_67, %c0_68, %c0_69], %127 {strides = array<i32>} : memref<4x8x8xbf16, #tpu.memory_space<vmem>>, vector<1x8x8xbf16>,
      %128 = vector.extract_strided_slice %123 {offsets = [0, 0], sizes = [8, 8], strides = [1, 1]} : vector<8x32xbf16> to vector<8x8xbf16>
      %c0_70 = arith.constant 0 : index
      %c0_71 = arith.constant 0 : index
      %c0_72 = arith.constant 0 : index
      %129 = vector.load %arg21[%c0_70, %c0_71, %c0_72] : memref<4x8x8xbf16, #tpu.memory_space<vmem>>, vector<1x8x8xbf16>
      %130 = vector.shape_cast %129 : vector<1x8x8xbf16> to vector<8x8xbf16>
      %131 = vector.shape_cast %128 : vector<8x8xbf16> to vector<1x8x8xbf16>
      tpu.vector_store %arg21[%c0_70, %c0_71, %c0_72], %131 {strides = array<i32>} : memref<4x8x8xbf16, #tpu.memory_space<vmem>>, vector<1x8x8xbf16>,
      %132 = vector.extract_strided_slice %122 {offsets = [0, 8], sizes = [8, 8], strides = [1, 1]} : vector<8x32xbf16> to vector<8x8xbf16>
      %c1 = arith.constant 1 : index
      %c0_73 = arith.constant 0 : index
      %c0_74 = arith.constant 0 : index
      %133 = vector.load %arg20[%c1, %c0_73, %c0_74] : memref<4x8x8xbf16, #tpu.memory_space<vmem>>, vector<1x8x8xbf16>
      %134 = vector.shape_cast %133 : vector<1x8x8xbf16> to vector<8x8xbf16>
      %135 = vector.shape_cast %132 : vector<8x8xbf16> to vector<1x8x8xbf16>
      tpu.vector_store %arg20[%c1, %c0_73, %c0_74], %135 {strides = array<i32>} : memref<4x8x8xbf16, #tpu.memory_space<vmem>>, vector<1x8x8xbf16>,
      %136 = vector.extract_strided_slice %123 {offsets = [0, 8], sizes = [8, 8], strides = [1, 1]} : vector<8x32xbf16> to vector<8x8xbf16>
      %c1_75 = arith.constant 1 : index
      %c0_76 = arith.constant 0 : index
      %c0_77 = arith.constant 0 : index
      %137 = vector.load %arg21[%c1_75, %c0_76, %c0_77] : memref<4x8x8xbf16, #tpu.memory_space<vmem>>, vector<1x8x8xbf16>
      %138 = vector.shape_cast %137 : vector<1x8x8xbf16> to vector<8x8xbf16>
      %139 = vector.shape_cast %136 : vector<8x8xbf16> to vector<1x8x8xbf16>
      tpu.vector_store %arg21[%c1_75, %c0_76, %c0_77], %139 {strides = array<i32>} : memref<4x8x8xbf16, #tpu.memory_space<vmem>>, vector<1x8x8xbf16>,
      %140 = vector.extract_strided_slice %122 {offsets = [0, 16], sizes = [8, 8], strides = [1, 1]} : vector<8x32xbf16> to vector<8x8xbf16>
      %c2 = arith.constant 2 : index
      %c0_78 = arith.constant 0 : index
      %c0_79 = arith.constant 0 : index
      %141 = vector.load %arg20[%c2, %c0_78, %c0_79] : memref<4x8x8xbf16, #tpu.memory_space<vmem>>, vector<1x8x8xbf16>
      %142 = vector.shape_cast %141 : vector<1x8x8xbf16> to vector<8x8xbf16>
      %143 = vector.shape_cast %140 : vector<8x8xbf16> to vector<1x8x8xbf16>
      tpu.vector_store %arg20[%c2, %c0_78, %c0_79], %143 {strides = array<i32>} : memref<4x8x8xbf16, #tpu.memory_space<vmem>>, vector<1x8x8xbf16>,
      %144 = vector.extract_strided_slice %123 {offsets = [0, 16], sizes = [8, 8], strides = [1, 1]} : vector<8x32xbf16> to vector<8x8xbf16>
      %c2_80 = arith.constant 2 : index
      %c0_81 = arith.constant 0 : index
      %c0_82 = arith.constant 0 : index
      %145 = vector.load %arg21[%c2_80, %c0_81, %c0_82] : memref<4x8x8xbf16, #tpu.memory_space<vmem>>, vector<1x8x8xbf16>
      %146 = vector.shape_cast %145 : vector<1x8x8xbf16> to vector<8x8xbf16>
      %147 = vector.shape_cast %144 : vector<8x8xbf16> to vector<1x8x8xbf16>
      tpu.vector_store %arg21[%c2_80, %c0_81, %c0_82], %147 {strides = array<i32>} : memref<4x8x8xbf16, #tpu.memory_space<vmem>>, vector<1x8x8xbf16>,
      %148 = vector.extract_strided_slice %122 {offsets = [0, 24], sizes = [8, 8], strides = [1, 1]} : vector<8x32xbf16> to vector<8x8xbf16>
      %c3 = arith.constant 3 : index
      %c0_83 = arith.constant 0 : index
      %c0_84 = arith.constant 0 : index
      %149 = vector.load %arg20[%c3, %c0_83, %c0_84] : memref<4x8x8xbf16, #tpu.memory_space<vmem>>, vector<1x8x8xbf16>
      %150 = vector.shape_cast %149 : vector<1x8x8xbf16> to vector<8x8xbf16>
      %151 = vector.shape_cast %148 : vector<8x8xbf16> to vector<1x8x8xbf16>
      tpu.vector_store %arg20[%c3, %c0_83, %c0_84], %151 {strides = array<i32>} : memref<4x8x8xbf16, #tpu.memory_space<vmem>>, vector<1x8x8xbf16>,
      %152 = vector.extract_strided_slice %123 {offsets = [0, 24], sizes = [8, 8], strides = [1, 1]} : vector<8x32xbf16> to vector<8x8xbf16>
      %c3_85 = arith.constant 3 : index
      %c0_86 = arith.constant 0 : index
      %c0_87 = arith.constant 0 : index
      %153 = vector.load %arg21[%c3_85, %c0_86, %c0_87] : memref<4x8x8xbf16, #tpu.memory_space<vmem>>, vector<1x8x8xbf16>
      %154 = vector.shape_cast %153 : vector<1x8x8xbf16> to vector<8x8xbf16>
      %155 = vector.shape_cast %152 : vector<8x8xbf16> to vector<1x8x8xbf16>
      tpu.vector_store %arg21[%c3_85, %c0_86, %c0_87], %155 {strides = array<i32>} : memref<4x8x8xbf16, #tpu.memory_space<vmem>>, vector<1x8x8xbf16>,
    } else {
    }
    %c8_i32 = arith.constant 8 : i32
    %3 = arith.muli %arg1, %c8_i32 : i32
    %4 = tpu.assume_multiple %3, 8 : i32
    %c0 = arith.constant 0 : index
    %5 = arith.index_cast %4 : i32 to index
    %c0_1 = arith.constant 0 : index
    %6 = vector.load %arg2[%c0, %5, %c0_1] : memref<1x8x32xf32, #tpu.memory_space<vmem>>, vector<1x8x32xf32>
    %7 = vector.shape_cast %6 : vector<1x8x32xf32> to vector<8x32xf32>
    %8 = arith.truncf %7 : vector<8x32xf32> to vector<8x32xbf16>
    %c0_2 = arith.constant 0 : index
    %c0_3 = arith.constant 0 : index
    %9 = vector.load %arg3[%c0_2, %c0_3] : memref<32x32xbf16, #tpu.memory_space<vmem>>, vector<32x32xbf16>
    %cst = arith.constant dense<0.000000e+00> : vector<8x32xf32>
    %10 = tpu.matmul %8, %9, %cst {dimension_numbers = #tpu.dot_dimension_numbers<[1], [0], [0], [1], [0, 0, 1, 1], [], []>} : vector<8x32xbf16>, vector<32x32xbf16>, vector<8x32xf32> -> vector<8x32xf32>
    %c0_4 = arith.constant 0 : index
    %c0_5 = arith.constant 0 : index
    %11 = vector.load %arg6[%c0_4, %c0_5] : memref<1x32xf32, #tpu.memory_space<vmem>>, vector<1x32xf32>
    %12 = vector.broadcast %11 : vector<1x32xf32> to vector<8x32xf32>
    %13 = arith.addf %10, %12 : vector<8x32xf32>
    %cst_6 = arith.constant 0.353553385 : f32
    %14 = vector.broadcast %cst_6 : f32 to vector<8x32xf32>
    %15 = arith.mulf %13, %14 : vector<8x32xf32>
    %16 = vector.shape_cast %15 : vector<8x32xf32> to vector<8x4x8xf32>
    %17 = tpu.transpose %16, [1, 0, 2] : vector<8x4x8xf32> -> vector<4x8x8xf32>
    %18 = arith.truncf %17 : vector<4x8x8xf32> to vector<4x8x8xbf16>
    %c0_7 = arith.constant 0 : index
    %c0_8 = arith.constant 0 : index
    %c0_9 = arith.constant 0 : index
    %19 = vector.load %arg20[%c0_7, %c0_8, %c0_9] : memref<4x8x8xbf16, #tpu.memory_space<vmem>>, vector<4x8x8xbf16>
    %c0_10 = arith.constant 0 : index
    %c0_11 = arith.constant 0 : index
    %c0_12 = arith.constant 0 : index
    %20 = vector.load %arg21[%c0_10, %c0_11, %c0_12] : memref<4x8x8xbf16, #tpu.memory_space<vmem>>, vector<4x8x8xbf16>
    "tpu.trace_start"() <{level = 10 : i32, message = "hqd,hkd->hqk"}> : () -> ()
    %cst_13 = arith.constant dense<0.000000e+00> : vector<4x8x8xf32>
    %21 = tpu.matmul %18, %19, %cst_13 {dimension_numbers = #tpu.dot_dimension_numbers<[2], [2], [1], [1], [0, 0, 0, 1, 1, 1], [0], [0]>} : vector<4x8x8xbf16>, vector<4x8x8xbf16>, vector<4x8x8xf32> -> vector<4x8x8xf32>
    "tpu.trace_stop"() : () -> ()
    %cst_14 = arith.constant dense<0xFF800000> : vector<4x8xf32>
    %22 = vector.multi_reduction <maximumf>, %21, %cst_14 [2] : vector<4x8x8xf32> to vector<4x8xf32>
    %23 = vector.shape_cast %22 : vector<4x8xf32> to vector<4x8x1xf32>
    %24 = vector.broadcast %23 : vector<4x8x1xf32> to vector<4x8x8xf32>
    %25 = arith.subf %21, %24 : vector<4x8x8xf32>
    %26 = math.exp %25 : vector<4x8x8xf32>
    %cst_15 = arith.constant dense<0.000000e+00> : vector<4x8xf32>
    %27 = vector.multi_reduction <add>, %26, %cst_15 [2] : vector<4x8x8xf32> to vector<4x8xf32>
    %28 = vector.shape_cast %27 : vector<4x8xf32> to vector<4x8x1xf32>
    %29 = tpu.reciprocal %28 {approx = true} : vector<4x8x1xf32> -> vector<4x8x1xf32>
    %30 = vector.broadcast %29 : vector<4x8x1xf32> to vector<4x8x8xf32>
    %31 = arith.mulf %26, %30 : vector<4x8x8xf32>
    %32 = arith.truncf %31 : vector<4x8x8xf32> to vector<4x8x8xbf16>
    "tpu.trace_start"() <{level = 10 : i32, message = "hqk,hkd->hqd"}> : () -> ()
    %cst_16 = arith.constant dense<0.000000e+00> : vector<4x8x8xf32>
    %33 = tpu.matmul %32, %20, %cst_16 {dimension_numbers = #tpu.dot_dimension_numbers<[2], [1], [1], [2], [0, 0, 0, 1, 1, 2], [0], [0]>} : vector<4x8x8xbf16>, vector<4x8x8xbf16>, vector<4x8x8xf32> -> vector<4x8x8xf32>
    "tpu.trace_stop"() : () -> ()
    %34 = tpu.transpose %33, [1, 0, 2] : vector<4x8x8xf32> -> vector<8x4x8xf32>
    %35 = vector.shape_cast %34 : vector<8x4x8xf32> to vector<8x32xf32>
    %36 = arith.truncf %35 : vector<8x32xf32> to vector<8x32xbf16>
    %c0_17 = arith.constant 0 : index
    %c0_18 = arith.constant 0 : index
    %37 = vector.load %arg9[%c0_17, %c0_18] : memref<32x32xbf16, #tpu.memory_space<vmem>>, vector<32x32xbf16>
    %cst_19 = arith.constant dense<0.000000e+00> : vector<8x32xf32>
    %38 = tpu.matmul %36, %37, %cst_19 {dimension_numbers = #tpu.dot_dimension_numbers<[1], [0], [0], [1], [0, 0, 1, 1], [], []>} : vector<8x32xbf16>, vector<32x32xbf16>, vector<8x32xf32> -> vector<8x32xf32>
    %c0_20 = arith.constant 0 : index
    %c0_21 = arith.constant 0 : index
    %39 = vector.load %arg10[%c0_20, %c0_21] : memref<1x32xf32, #tpu.memory_space<vmem>>, vector<1x32xf32>
    %40 = vector.broadcast %39 : vector<1x32xf32> to vector<8x32xf32>
    %41 = arith.addf %38, %40 : vector<8x32xf32>
    %42 = arith.addf %7, %41 : vector<8x32xf32>
    %cst_22 = arith.constant dense<0.000000e+00> : vector<8xf32>
    %43 = vector.multi_reduction <add>, %42, %cst_22 [1] : vector<8x32xf32> to vector<8xf32>
    %44 = vector.shape_cast %43 : vector<8xf32> to vector<8x1xf32>
    %cst_23 = arith.constant 3.200000e+01 : f32
    %45 = vector.broadcast %cst_23 : f32 to vector<8x1xf32>
    %46 = arith.divf %44, %45 : vector<8x1xf32>
    %47 = vector.broadcast %46 : vector<8x1xf32> to vector<8x32xf32>
    %48 = arith.subf %42, %47 : vector<8x32xf32>
    %49 = arith.mulf %48, %48 : vector<8x32xf32>
    %cst_24 = arith.constant dense<0.000000e+00> : vector<8xf32>
    %50 = vector.multi_reduction <add>, %49, %cst_24 [1] : vector<8x32xf32> to vector<8xf32>
    %51 = vector.shape_cast %50 : vector<8xf32> to vector<8x1xf32>
    %cst_25 = arith.constant 3.200000e+01 : f32
    %52 = vector.broadcast %cst_25 : f32 to vector<8x1xf32>
    %53 = arith.divf %51, %52 : vector<8x1xf32>
    %54 = vector.broadcast %46 : vector<8x1xf32> to vector<8x32xf32>
    %55 = arith.subf %42, %54 : vector<8x32xf32>
    %cst_26 = arith.constant 9.99999974E-6 : f32
    %56 = vector.broadcast %cst_26 : f32 to vector<8x1xf32>
    %57 = arith.addf %53, %56 : vector<8x1xf32>
    %58 = math.rsqrt %57 : vector<8x1xf32>
    %59 = vector.broadcast %58 : vector<8x1xf32> to vector<8x32xf32>
    %60 = arith.mulf %55, %59 : vector<8x32xf32>
    %c0_27 = arith.constant 0 : index
    %c0_28 = arith.constant 0 : index
    %61 = vector.load %arg11[%c0_27, %c0_28] : memref<1x32xf32, #tpu.memory_space<vmem>>, vector<1x32xf32>
    %62 = vector.broadcast %61 : vector<1x32xf32> to vector<8x32xf32>
    %63 = arith.mulf %60, %62 : vector<8x32xf32>
    %c0_29 = arith.constant 0 : index
    %c0_30 = arith.constant 0 : index
    %64 = vector.load %arg12[%c0_29, %c0_30] : memref<1x32xf32, #tpu.memory_space<vmem>>, vector<1x32xf32>
    %65 = vector.broadcast %64 : vector<1x32xf32> to vector<8x32xf32>
    %66 = arith.addf %63, %65 : vector<8x32xf32>
    %67 = arith.truncf %66 : vector<8x32xf32> to vector<8x32xbf16>
    %c0_31 = arith.constant 0 : index
    %c0_32 = arith.constant 0 : index
    %68 = vector.load %arg13[%c0_31, %c0_32] : memref<32x64xbf16, #tpu.memory_space<vmem>>, vector<32x64xbf16>
    %cst_33 = arith.constant dense<0.000000e+00> : vector<8x64xf32>
    %69 = tpu.matmul %67, %68, %cst_33 {dimension_numbers = #tpu.dot_dimension_numbers<[1], [0], [0], [1], [0, 0, 1, 1], [], []>} : vector<8x32xbf16>, vector<32x64xbf16>, vector<8x64xf32> -> vector<8x64xf32>
    %c0_34 = arith.constant 0 : index
    %c0_35 = arith.constant 0 : index
    %70 = vector.load %arg14[%c0_34, %c0_35] : memref<1x64xf32, #tpu.memory_space<vmem>>, vector<1x64xf32>
    %71 = vector.broadcast %70 : vector<1x64xf32> to vector<8x64xf32>
    %72 = arith.addf %69, %71 : vector<8x64xf32>
    %cst_36 = arith.constant 0.000000e+00 : f32
    %73 = vector.broadcast %cst_36 : f32 to vector<8x64xf32>
    %74 = arith.maximumf %72, %73 : vector<8x64xf32>
    %75 = arith.truncf %74 : vector<8x64xf32> to vector<8x64xbf16>
    %c0_37 = arith.constant 0 : index
    %c0_38 = arith.constant 0 : index
    %76 = vector.load %arg15[%c0_37, %c0_38] : memref<64x32xbf16, #tpu.memory_space<vmem>>, vector<64x32xbf16>
    %cst_39 = arith.constant dense<0.000000e+00> : vector<8x32xf32>
    %77 = tpu.matmul %75, %76, %cst_39 {dimension_numbers = #tpu.dot_dimension_numbers<[1], [0], [0], [1], [0, 0, 1, 1], [], []>} : vector<8x64xbf16>, vector<64x32xbf16>, vector<8x32xf32> -> vector<8x32xf32>
    %c0_40 = arith.constant 0 : index
    %c0_41 = arith.constant 0 : index
    %78 = vector.load %arg16[%c0_40, %c0_41] : memref<1x32xf32, #tpu.memory_space<vmem>>, vector<1x32xf32>
    %79 = vector.broadcast %78 : vector<1x32xf32> to vector<8x32xf32>
    %80 = arith.addf %77, %79 : vector<8x32xf32>
    %81 = arith.addf %66, %80 : vector<8x32xf32>
    %cst_42 = arith.constant dense<0.000000e+00> : vector<8xf32>
    %82 = vector.multi_reduction <add>, %81, %cst_42 [1] : vector<8x32xf32> to vector<8xf32>
    %83 = vector.shape_cast %82 : vector<8xf32> to vector<8x1xf32>
    %cst_43 = arith.constant 3.200000e+01 : f32
    %84 = vector.broadcast %cst_43 : f32 to vector<8x1xf32>
    %85 = arith.divf %83, %84 : vector<8x1xf32>
    %86 = vector.broadcast %85 : vector<8x1xf32> to vector<8x32xf32>
    %87 = arith.subf %81, %86 : vector<8x32xf32>
    %88 = arith.mulf %87, %87 : vector<8x32xf32>
    %cst_44 = arith.constant dense<0.000000e+00> : vector<8xf32>
    %89 = vector.multi_reduction <add>, %88, %cst_44 [1] : vector<8x32xf32> to vector<8xf32>
    %90 = vector.shape_cast %89 : vector<8xf32> to vector<8x1xf32>
    %cst_45 = arith.constant 3.200000e+01 : f32
    %91 = vector.broadcast %cst_45 : f32 to vector<8x1xf32>
    %92 = arith.divf %90, %91 : vector<8x1xf32>
    %93 = vector.broadcast %85 : vector<8x1xf32> to vector<8x32xf32>
    %94 = arith.subf %81, %93 : vector<8x32xf32>
    %cst_46 = arith.constant 9.99999974E-6 : f32
    %95 = vector.broadcast %cst_46 : f32 to vector<8x1xf32>
    %96 = arith.addf %92, %95 : vector<8x1xf32>
    %97 = math.rsqrt %96 : vector<8x1xf32>
    %98 = vector.broadcast %97 : vector<8x1xf32> to vector<8x32xf32>
    %99 = arith.mulf %94, %98 : vector<8x32xf32>
    %c0_47 = arith.constant 0 : index
    %c0_48 = arith.constant 0 : index
    %100 = vector.load %arg17[%c0_47, %c0_48] : memref<1x32xf32, #tpu.memory_space<vmem>>, vector<1x32xf32>
    %101 = vector.broadcast %100 : vector<1x32xf32> to vector<8x32xf32>
    %102 = arith.mulf %99, %101 : vector<8x32xf32>
    %c0_49 = arith.constant 0 : index
    %c0_50 = arith.constant 0 : index
    %103 = vector.load %arg18[%c0_49, %c0_50] : memref<1x32xf32, #tpu.memory_space<vmem>>, vector<1x32xf32>
    %104 = vector.broadcast %103 : vector<1x32xf32> to vector<8x32xf32>
    %105 = arith.addf %102, %104 : vector<8x32xf32>
    %c0_51 = arith.constant 0 : index
    %c0_52 = arith.constant 0 : index
    %c0_53 = arith.constant 0 : index
    %106 = vector.load %arg19[%c0_51, %c0_52, %c0_53] : memref<1x8x32xf32, #tpu.memory_space<vmem>>, vector<1x8x32xf32>
    %107 = vector.shape_cast %106 : vector<1x8x32xf32> to vector<8x32xf32>
    %108 = vector.shape_cast %105 : vector<8x32xf32> to vector<1x8x32xf32>
    tpu.vector_store %arg19[%c0_51, %c0_52, %c0_53], %108 {strides = array<i32>} : memref<1x8x32xf32, #tpu.memory_space<vmem>>, vector<1x8x32xf32>,
    return
  }
  func.func @transform_0(%arg0: i32, %arg1: i32) -> (i32, i32, i32) {
    %c0_i32 = arith.constant 0 : i32
    %c0_i32_0 = arith.constant 0 : i32
    %c0_i32_1 = arith.constant 0 : i32
    return %arg0, %c0_i32, %c0_i32_0 : i32, i32, i32
  }
  func.func @transform_1(%arg0: i32, %arg1: i32) -> (i32, i32) {
    %c0_i32 = arith.constant 0 : i32
    %c0_i32_0 = arith.constant 0 : i32
    %c0_i32_1 = arith.constant 0 : i32
    return %c0_i32, %c0_i32_0 : i32, i32
  }
  func.func @transform_2(%arg0: i32, %arg1: i32) -> (i32, i32) {
    %c0_i32 = arith.constant 0 : i32
    %c0_i32_0 = arith.constant 0 : i32
    %c0_i32_1 = arith.constant 0 : i32
    return %c0_i32, %c0_i32_0 : i32, i32
  }
  func.func @transform_3(%arg0: i32, %arg1: i32) -> (i32, i32) {
    %c0_i32 = arith.constant 0 : i32
    %c0_i32_0 = arith.constant 0 : i32
    %c0_i32_1 = arith.constant 0 : i32
    return %c0_i32, %c0_i32_0 : i32, i32
  }
  func.func @transform_4(%arg0: i32, %arg1: i32) -> (i32, i32) {
    %c0_i32 = arith.constant 0 : i32
    %c0_i32_0 = arith.constant 0 : i32
    %c0_i32_1 = arith.constant 0 : i32
    return %c0_i32, %c0_i32_0 : i32, i32
  }
  func.func @transform_5(%arg0: i32, %arg1: i32) -> (i32, i32) {
    %c0_i32 = arith.constant 0 : i32
    %c0_i32_0 = arith.constant 0 : i32
    %c0_i32_1 = arith.constant 0 : i32
    return %c0_i32, %c0_i32_0 : i32, i32
  }
  func.func @transform_6(%arg0: i32, %arg1: i32) -> (i32, i32) {
    %c0_i32 = arith.constant 0 : i32
    %c0_i32_0 = arith.constant 0 : i32
    %c0_i32_1 = arith.constant 0 : i32
    return %c0_i32, %c0_i32_0 : i32, i32
  }
  func.func @transform_7(%arg0: i32, %arg1: i32) -> (i32, i32) {
    %c0_i32 = arith.constant 0 : i32
    %c0_i32_0 = arith.constant 0 : i32
    %c0_i32_1 = arith.constant 0 : i32
    return %c0_i32, %c0_i32_0 : i32, i32
  }
  func.func @transform_8(%arg0: i32, %arg1: i32) -> (i32, i32) {
    %c0_i32 = arith.constant 0 : i32
    %c0_i32_0 = arith.constant 0 : i32
    %c0_i32_1 = arith.constant 0 : i32
    return %c0_i32, %c0_i32_0 : i32, i32
  }
  func.func @transform_9(%arg0: i32, %arg1: i32) -> (i32, i32) {
    %c0_i32 = arith.constant 0 : i32
    %c0_i32_0 = arith.constant 0 : i32
    %c0_i32_1 = arith.constant 0 : i32
    return %c0_i32, %c0_i32_0 : i32, i32
  }
  func.func @transform_10(%arg0: i32, %arg1: i32) -> (i32, i32) {
    %c0_i32 = arith.constant 0 : i32
    %c0_i32_0 = arith.constant 0 : i32
    %c0_i32_1 = arith.constant 0 : i32
    return %c0_i32, %c0_i32_0 : i32, i32
  }
  func.func @transform_11(%arg0: i32, %arg1: i32) -> (i32, i32) {
    %c0_i32 = arith.constant 0 : i32
    %c0_i32_0 = arith.constant 0 : i32
    %c0_i32_1 = arith.constant 0 : i32
    return %c0_i32, %c0_i32_0 : i32, i32
  }
  func.func @transform_12(%arg0: i32, %arg1: i32) -> (i32, i32) {
    %c0_i32 = arith.constant 0 : i32
    %c0_i32_0 = arith.constant 0 : i32
    %c0_i32_1 = arith.constant 0 : i32
    return %c0_i32, %c0_i32_0 : i32, i32
  }
  func.func @transform_13(%arg0: i32, %arg1: i32) -> (i32, i32) {
    %c0_i32 = arith.constant 0 : i32
    %c0_i32_0 = arith.constant 0 : i32
    %c0_i32_1 = arith.constant 0 : i32
    return %c0_i32, %c0_i32_0 : i32, i32
  }
  func.func @transform_14(%arg0: i32, %arg1: i32) -> (i32, i32) {
    %c0_i32 = arith.constant 0 : i32
    %c0_i32_0 = arith.constant 0 : i32
    %c0_i32_1 = arith.constant 0 : i32
    return %c0_i32, %c0_i32_0 : i32, i32
  }
  func.func @transform_15(%arg0: i32, %arg1: i32) -> (i32, i32) {
    %c0_i32 = arith.constant 0 : i32
    %c0_i32_0 = arith.constant 0 : i32
    %c0_i32_1 = arith.constant 0 : i32
    return %c0_i32, %c0_i32_0 : i32, i32
  }
  func.func @transform_16(%arg0: i32, %arg1: i32) -> (i32, i32) {
    %c0_i32 = arith.constant 0 : i32
    %c0_i32_0 = arith.constant 0 : i32
    %c0_i32_1 = arith.constant 0 : i32
    return %c0_i32, %c0_i32_0 : i32, i32
  }
  func.func @transform_17(%arg0: i32, %arg1: i32) -> (i32, i32, i32) {
    %c0_i32 = arith.constant 0 : i32
    %c0_i32_0 = arith.constant 0 : i32
    return %arg0, %arg1, %c0_i32 : i32, i32, i32
  }
}

module attributes {stable_mosaic.version = 11 : i64} {
  func.func @encoder_block_kernel(%arg0: i32, %arg1: i32, %arg2: memref<1x8x32xf32, #tpu.memory_space<vmem>>, %arg3: memref<32x32xbf16, #tpu.memory_space<vmem>>, %arg4: memref<32x32xbf16, #tpu.memory_space<vmem>>, %arg5: memref<32x32xbf16, #tpu.memory_space<vmem>>, %arg6: memref<1x32xf32, #tpu.memory_space<vmem>>, %arg7: memref<1x32xf32, #tpu.memory_space<vmem>>, %arg8: memref<1x32xf32, #tpu.memory_space<vmem>>, %arg9: memref<32x32xbf16, #tpu.memory_space<vmem>>, %arg10: memref<1x32xf32, #tpu.memory_space<vmem>>, %arg11: memref<1x32xf32, #tpu.memory_space<vmem>>, %arg12: memref<1x32xf32, #tpu.memory_space<vmem>>, %arg13: memref<32x64xbf16, #tpu.memory_space<vmem>>, %arg14: memref<1x64xf32, #tpu.memory_space<vmem>>, %arg15: memref<64x32xbf16, #tpu.memory_space<vmem>>, %arg16: memref<1x32xf32, #tpu.memory_space<vmem>>, %arg17: memref<1x32xf32, #tpu.memory_space<vmem>>, %arg18: memref<1x32xf32, #tpu.memory_space<vmem>>, %arg19: memref<1x8x32xf32, #tpu.memory_space<vmem>>, %arg20: memref<4x8x8xbf16, #tpu.memory_space<vmem>>, %arg21: memref<4x8x8xbf16, #tpu.memory_space<vmem>>) attributes {dimension_semantics = [#tpu.dimension_semantics<parallel>, #tpu.dimension_semantics<arbitrary>], iteration_bounds = array<i64: 2, 1>, scalar_prefetch = 0 : i64, scratch_operands = 2 : i64, tpu.core_type = #tpu.core_type<tc>, window_params = [{transform_indices = @transform_0, window_bounds = array<i64: 1, 8, 32>}, {pipeline_mode = #tpu.pipeline_mode<synchronous>, transform_indices = @transform_1, window_bounds = array<i64: 32, 32>}, {pipeline_mode = #tpu.pipeline_mode<synchronous>, transform_indices = @transform_2, window_bounds = array<i64: 32, 32>}, {pipeline_mode = #tpu.pipeline_mode<synchronous>, transform_indices = @transform_3, window_bounds = array<i64: 32, 32>}, {pipeline_mode = #tpu.pipeline_mode<synchronous>, transform_indices = @transform_4, window_bounds = array<i64: 1, 32>}, {pipeline_mode = #tpu.pipeline_mode<synchronous>, transform_indices = @transform_5, window_bounds = array<i64: 1, 32>}, {pipeline_mode = #tpu.pipeline_mode<synchronous>, transform_indices = @transform_6, window_bounds = array<i64: 1, 32>}, {pipeline_mode = #tpu.pipeline_mode<synchronous>, transform_indices = @transform_7, window_bounds = array<i64: 32, 32>}, {pipeline_mode = #tpu.pipeline_mode<synchronous>, transform_indices = @transform_8, window_bounds = array<i64: 1, 32>}, {pipeline_mode = #tpu.pipeline_mode<synchronous>, transform_indices = @transform_9, window_bounds = array<i64: 1, 32>}, {pipeline_mode = #tpu.pipeline_mode<synchronous>, transform_indices = @transform_10, window_bounds = array<i64: 1, 32>}, {pipeline_mode = #tpu.pipeline_mode<synchronous>, transform_indices = @transform_11, window_bounds = array<i64: 32, 64>}, {pipeline_mode = #tpu.pipeline_mode<synchronous>, transform_indices = @transform_12, window_bounds = array<i64: 1, 64>}, {pipeline_mode = #tpu.pipeline_mode<synchronous>, transform_indices = @transform_13, window_bounds = array<i64: 64, 32>}, {pipeline_mode = #tpu.pipeline_mode<synchronous>, transform_indices = @transform_14, window_bounds = array<i64: 1, 32>}, {pipeline_mode = #tpu.pipeline_mode<synchronous>, transform_indices = @transform_15, window_bounds = array<i64: 1, 32>}, {pipeline_mode = #tpu.pipeline_mode<synchronous>, transform_indices = @transform_16, window_bounds = array<i64: 1, 32>}, {transform_indices = @transform_17, window_bounds = array<i64: 1, 8, 32>}]} {
    %c0_i32 = arith.constant 0 : i32
    %0 = arith.cmpi eq, %arg1, %c0_i32 : i32
    %1 = arith.extui %0 : i1 to i32
    %c0_i32_0 = arith.constant 0 : i32
    %2 = arith.cmpi ne, %1, %c0_i32_0 : i32
    scf.if %2 {
      %c0_54 = arith.constant 0 : index
      %c0_55 = arith.constant 0 : index
      %c0_56 = arith.constant 0 : index
      %109 = vector.load %arg2[%c0_54, %c0_55, %c0_56] : memref<1x8x32xf32, #tpu.memory_space<vmem>>, vector<1x8x32xf32>
      %110 = vector.shape_cast %109 : vector<1x8x32xf32> to vector<8x32xf32>
      %111 = arith.truncf %110 : vector<8x32xf32> to vector<8x32xbf16>
      %c0_57 = arith.constant 0 : index
      %c0_58 = arith.constant 0 : index
      %112 = vector.load %arg4[%c0_57, %c0_58] : memref<32x32xbf16, #tpu.memory_space<vmem>>, vector<32x32xbf16>
      %cst_59 = arith.constant dense<0.000000e+00> : vector<8x32xf32>
      %113 = tpu.matmul %111, %112, %cst_59 {dimension_numbers = #tpu.dot_dimension_numbers<[1], [0], [0], [1], [0, 0, 1, 1], [], []>} : vector<8x32xbf16>, vector<32x32xbf16>, vector<8x32xf32> -> vector<8x32xf32>
      %c0_60 = arith.constant 0 : index
      %c0_61 = arith.constant 0 : index
      %114 = vector.load %arg7[%c0_60, %c0_61] : memref<1x32xf32, #tpu.memory_space<vmem>>, vector<1x32xf32>
      %115 = vector.broadcast %114 : vector<1x32xf32> to vector<8x32xf32>
      %116 = arith.addf %113, %115 : vector<8x32xf32>
      %c0_62 = arith.constant 0 : index
      %c0_63 = arith.constant 0 : index
      %117 = vector.load %arg5[%c0_62, %c0_63] : memref<32x32xbf16, #tpu.memory_space<vmem>>, vector<32x32xbf16>
      %cst_64 = arith.constant dense<0.000000e+00> : vector<8x32xf32>
      %118 = tpu.matmul %111, %117, %cst_64 {dimension_numbers = #tpu.dot_dimension_numbers<[1], [0], [0], [1], [0, 0, 1, 1], [], []>} : vector<8x32xbf16>, vector<32x32xbf16>, vector<8x32xf32> -> vector<8x32xf32>
      %c0_65 = arith.constant 0 : index
      %c0_66 = arith.constant 0 : index
      %119 = vector.load %arg8[%c0_65, %c0_66] : memref<1x32xf32, #tpu.memory_space<vmem>>, vector<1x32xf32>
      %120 = vector.broadcast %119 : vector<1x32xf32> to vector<8x32xf32>
      %121 = arith.addf %118, %120 : vector<8x32xf32>
      %122 = arith.truncf %116 : vector<8x32xf32> to vector<8x32xbf16>
      %123 = arith.truncf %121 : vector<8x32xf32> to vector<8x32xbf16>
      %124 = vector.extract_strided_slice %122 {offsets = [0, 0], sizes = [8, 8], strides = [1, 1]} : vector<8x32xbf16> to vector<8x8xbf16>
      %c0_67 = arith.constant 0 : index
      %c0_68 = arith.constant 0 : index
      %c0_69 = arith.constant 0 : index
      %125 = vector.load %arg20[%c0_67, %c0_68, %c0_69] : memref<4x8x8xbf16, #tpu.memory_space<vmem>>, vector<1x8x8xbf16>
      %126 = vector.shape_cast %125 : vector<1x8x8xbf16> to vector<8x8xbf16>
      %127 = vector.shape_cast %124 : vector<8x8xbf16> to vector<1x8x8xbf16>
      tpu.vector_store %arg20[%c0_67, %c0_68, %c0_69], %127 {strides = array<i32>} : memref<4x8x8xbf16, #tpu.memory_space<vmem>>, vector<1x8x8xbf16>,
      %128 = vector.extract_strided_slice %123 {offsets = [0, 0], sizes = [8, 8], strides = [1, 1]} : vector<8x32xbf16> to vector<8x8xbf16>
      %c0_70 = arith.constant 0 : index
      %c0_71 = arith.constant 0 : index
      %c0_72 = arith.constant 0 : index
      %129 = vector.load %arg21[%c0_70, %c0_71, %c0_72] : memref<4x8x8xbf16, #tpu.memory_space<vmem>>, vector<1x8x8xbf16>
      %130 = vector.shape_cast %129 : vector<1x8x8xbf16> to vector<8x8xbf16>
      %131 = vector.shape_cast %128 : vector<8x8xbf16> to vector<1x8x8xbf16>
      tpu.vector_store %arg21[%c0_70, %c0_71, %c0_72], %131 {strides = array<i32>} : memref<4x8x8xbf16, #tpu.memory_space<vmem>>, vector<1x8x8xbf16>,
      %132 = vector.extract_strided_slice %122 {offsets = [0, 8], sizes = [8, 8], strides = [1, 1]} : vector<8x32xbf16> to vector<8x8xbf16>
      %c1 = arith.constant 1 : index
      %c0_73 = arith.constant 0 : index
      %c0_74 = arith.constant 0 : index
      %133 = vector.load %arg20[%c1, %c0_73, %c0_74] : memref<4x8x8xbf16, #tpu.memory_space<vmem>>, vector<1x8x8xbf16>
      %134 = vector.shape_cast %133 : vector<1x8x8xbf16> to vector<8x8xbf16>
      %135 = vector.shape_cast %132 : vector<8x8xbf16> to vector<1x8x8xbf16>
      tpu.vector_store %arg20[%c1, %c0_73, %c0_74], %135 {strides = array<i32>} : memref<4x8x8xbf16, #tpu.memory_space<vmem>>, vector<1x8x8xbf16>,
      %136 = vector.extract_strided_slice %123 {offsets = [0, 8], sizes = [8, 8], strides = [1, 1]} : vector<8x32xbf16> to vector<8x8xbf16>
      %c1_75 = arith.constant 1 : index
      %c0_76 = arith.constant 0 : index
      %c0_77 = arith.constant 0 : index
      %137 = vector.load %arg21[%c1_75, %c0_76, %c0_77] : memref<4x8x8xbf16, #tpu.memory_space<vmem>>, vector<1x8x8xbf16>
      %138 = vector.shape_cast %137 : vector<1x8x8xbf16> to vector<8x8xbf16>
      %139 = vector.shape_cast %136 : vector<8x8xbf16> to vector<1x8x8xbf16>
      tpu.vector_store %arg21[%c1_75, %c0_76, %c0_77], %139 {strides = array<i32>} : memref<4x8x8xbf16, #tpu.memory_space<vmem>>, vector<1x8x8xbf16>,
      %140 = vector.extract_strided_slice %122 {offsets = [0, 16], sizes = [8, 8], strides = [1, 1]} : vector<8x32xbf16> to vector<8x8xbf16>
      %c2 = arith.constant 2 : index
      %c0_78 = arith.constant 0 : index
      %c0_79 = arith.constant 0 : index
      %141 = vector.load %arg20[%c2, %c0_78, %c0_79] : memref<4x8x8xbf16, #tpu.memory_space<vmem>>, vector<1x8x8xbf16>
      %142 = vector.shape_cast %141 : vector<1x8x8xbf16> to vector<8x8xbf16>
      %143 = vector.shape_cast %140 : vector<8x8xbf16> to vector<1x8x8xbf16>
      tpu.vector_store %arg20[%c2, %c0_78, %c0_79], %143 {strides = array<i32>} : memref<4x8x8xbf16, #tpu.memory_space<vmem>>, vector<1x8x8xbf16>,
      %144 = vector.extract_strided_slice %123 {offsets = [0, 16], sizes = [8, 8], strides = [1, 1]} : vector<8x32xbf16> to vector<8x8xbf16>
      %c2_80 = arith.constant 2 : index
      %c0_81 = arith.constant 0 : index
      %c0_82 = arith.constant 0 : index
      %145 = vector.load %arg21[%c2_80, %c0_81, %c0_82] : memref<4x8x8xbf16, #tpu.memory_space<vmem>>, vector<1x8x8xbf16>
      %146 = vector.shape_cast %145 : vector<1x8x8xbf16> to vector<8x8xbf16>
      %147 = vector.shape_cast %144 : vector<8x8xbf16> to vector<1x8x8xbf16>
      tpu.vector_store %arg21[%c2_80, %c0_81, %c0_82], %147 {strides = array<i32>} : memref<4x8x8xbf16, #tpu.memory_space<vmem>>, vector<1x8x8xbf16>,
      %148 = vector.extract_strided_slice %122 {offsets = [0, 24], sizes = [8, 8], strides = [1, 1]} : vector<8x32xbf16> to vector<8x8xbf16>
      %c3 = arith.constant 3 : index
      %c0_83 = arith.constant 0 : index
      %c0_84 = arith.constant 0 : index
      %149 = vector.load %arg20[%c3, %c0_83, %c0_84] : memref<4x8x8xbf16, #tpu.memory_space<vmem>>, vector<1x8x8xbf16>
      %150 = vector.shape_cast %149 : vector<1x8x8xbf16> to vector<8x8xbf16>
      %151 = vector.shape_cast %148 : vector<8x8xbf16> to vector<1x8x8xbf16>
      tpu.vector_store %arg20[%c3, %c0_83, %c0_84], %151 {strides = array<i32>} : memref<4x8x8xbf16, #tpu.memory_space<vmem>>, vector<1x8x8xbf16>,
      %152 = vector.extract_strided_slice %123 {offsets = [0, 24], sizes = [8, 8], strides = [1, 1]} : vector<8x32xbf16> to vector<8x8xbf16>
      %c3_85 = arith.constant 3 : index
      %c0_86 = arith.constant 0 : index
      %c0_87 = arith.constant 0 : index
      %153 = vector.load %arg21[%c3_85, %c0_86, %c0_87] : memref<4x8x8xbf16, #tpu.memory_space<vmem>>, vector<1x8x8xbf16>
      %154 = vector.shape_cast %153 : vector<1x8x8xbf16> to vector<8x8xbf16>
      %155 = vector.shape_cast %152 : vector<8x8xbf16> to vector<1x8x8xbf16>
      tpu.vector_store %arg21[%c3_85, %c0_86, %c0_87], %155 {strides = array<i32>} : memref<4x8x8xbf16, #tpu.memory_space<vmem>>, vector<1x8x8xbf16>,
    } else {
    }
    %c8_i32 = arith.constant 8 : i32
    %3 = arith.muli %arg1, %c8_i32 : i32
    %4 = tpu.assume_multiple %3, 8 : i32
    %c0 = arith.constant 0 : index
    %5 = arith.index_cast %4 : i32 to index
    %c0_1 = arith.constant 0 : index
    %6 = vector.load %arg2[%c0, %5, %c0_1] : memref<1x8x32xf32, #tpu.memory_space<vmem>>, vector<1x8x32xf32>
    %7 = vector.shape_cast %6 : vector<1x8x32xf32> to vector<8x32xf32>
    %8 = arith.truncf %7 : vector<8x32xf32> to vector<8x32xbf16>
    %c0_2 = arith.constant 0 : index
    %c0_3 = arith.constant 0 : index
    %9 = vector.load %arg3[%c0_2, %c0_3] : memref<32x32xbf16, #tpu.memory_space<vmem>>, vector<32x32xbf16>
    %cst = arith.constant dense<0.000000e+00> : vector<8x32xf32>
    %10 = tpu.matmul %8, %9, %cst {dimension_numbers = #tpu.dot_dimension_numbers<[1], [0], [0], [1], [0, 0, 1, 1], [], []>} : vector<8x32xbf16>, vector<32x32xbf16>, vector<8x32xf32> -> vector<8x32xf32>
    %c0_4 = arith.constant 0 : index
    %c0_5 = arith.constant 0 : index
    %11 = vector.load %arg6[%c0_4, %c0_5] : memref<1x32xf32, #tpu.memory_space<vmem>>, vector<1x32xf32>
    %12 = vector.broadcast %11 : vector<1x32xf32> to vector<8x32xf32>
    %13 = arith.addf %10, %12 : vector<8x32xf32>
    %cst_6 = arith.constant 0.353553385 : f32
    %14 = vector.broadcast %cst_6 : f32 to vector<8x32xf32>
    %15 = arith.mulf %13, %14 : vector<8x32xf32>
    %16 = vector.shape_cast %15 : vector<8x32xf32> to vector<8x4x8xf32>
    %17 = tpu.transpose %16, [1, 0, 2] : vector<8x4x8xf32> -> vector<4x8x8xf32>
    %18 = arith.truncf %17 : vector<4x8x8xf32> to vector<4x8x8xbf16>
    %c0_7 = arith.constant 0 : index
    %c0_8 = arith.constant 0 : index
    %c0_9 = arith.constant 0 : index
    %19 = vector.load %arg20[%c0_7, %c0_8, %c0_9] : memref<4x8x8xbf16, #tpu.memory_space<vmem>>, vector<4x8x8xbf16>
    %c0_10 = arith.constant 0 : index
    %c0_11 = arith.constant 0 : index
    %c0_12 = arith.constant 0 : index
    %20 = vector.load %arg21[%c0_10, %c0_11, %c0_12] : memref<4x8x8xbf16, #tpu.memory_space<vmem>>, vector<4x8x8xbf16>
    "tpu.trace_start"() <{level = 10 : i32, message = "hqd,hkd->hqk"}> : () -> ()
    %cst_13 = arith.constant dense<0.000000e+00> : vector<4x8x8xf32>
    %21 = tpu.matmul %18, %19, %cst_13 {dimension_numbers = #tpu.dot_dimension_numbers<[2], [2], [1], [1], [0, 0, 0, 1, 1, 1], [0], [0]>} : vector<4x8x8xbf16>, vector<4x8x8xbf16>, vector<4x8x8xf32> -> vector<4x8x8xf32>
    "tpu.trace_stop"() : () -> ()
    %cst_14 = arith.constant dense<0xFF800000> : vector<4x8xf32>
    %22 = vector.multi_reduction <maximumf>, %21, %cst_14 [2] : vector<4x8x8xf32> to vector<4x8xf32>
    %23 = vector.shape_cast %22 : vector<4x8xf32> to vector<4x8x1xf32>
    %24 = vector.broadcast %23 : vector<4x8x1xf32> to vector<4x8x8xf32>
    %25 = arith.subf %21, %24 : vector<4x8x8xf32>
    %26 = math.exp %25 : vector<4x8x8xf32>
    %cst_15 = arith.constant dense<0.000000e+00> : vector<4x8xf32>
    %27 = vector.multi_reduction <add>, %26, %cst_15 [2] : vector<4x8x8xf32> to vector<4x8xf32>
    %28 = vector.shape_cast %27 : vector<4x8xf32> to vector<4x8x1xf32>
    %29 = tpu.reciprocal %28 {approx = true} : vector<4x8x1xf32> -> vector<4x8x1xf32>
    %30 = vector.broadcast %29 : vector<4x8x1xf32> to vector<4x8x8xf32>
    %31 = arith.mulf %26, %30 : vector<4x8x8xf32>
    %32 = arith.truncf %31 : vector<4x8x8xf32> to vector<4x8x8xbf16>
    "tpu.trace_start"() <{level = 10 : i32, message = "hqk,hkd->hqd"}> : () -> ()
    %cst_16 = arith.constant dense<0.000000e+00> : vector<4x8x8xf32>
    %33 = tpu.matmul %32, %20, %cst_16 {dimension_numbers = #tpu.dot_dimension_numbers<[2], [1], [1], [2], [0, 0, 0, 1, 1, 2], [0], [0]>} : vector<4x8x8xbf16>, vector<4x8x8xbf16>, vector<4x8x8xf32> -> vector<4x8x8xf32>
    "tpu.trace_stop"() : () -> ()
    %34 = tpu.transpose %33, [1, 0, 2] : vector<4x8x8xf32> -> vector<8x4x8xf32>
    %35 = vector.shape_cast %34 : vector<8x4x8xf32> to vector<8x32xf32>
    %36 = arith.truncf %35 : vector<8x32xf32> to vector<8x32xbf16>
    %c0_17 = arith.constant 0 : index
    %c0_18 = arith.constant 0 : index
    %37 = vector.load %arg9[%c0_17, %c0_18] : memref<32x32xbf16, #tpu.memory_space<vmem>>, vector<32x32xbf16>
    %cst_19 = arith.constant dense<0.000000e+00> : vector<8x32xf32>
    %38 = tpu.matmul %36, %37, %cst_19 {dimension_numbers = #tpu.dot_dimension_numbers<[1], [0], [0], [1], [0, 0, 1, 1], [], []>} : vector<8x32xbf16>, vector<32x32xbf16>, vector<8x32xf32> -> vector<8x32xf32>
    %c0_20 = arith.constant 0 : index
    %c0_21 = arith.constant 0 : index
    %39 = vector.load %arg10[%c0_20, %c0_21] : memref<1x32xf32, #tpu.memory_space<vmem>>, vector<1x32xf32>
    %40 = vector.broadcast %39 : vector<1x32xf32> to vector<8x32xf32>
    %41 = arith.addf %38, %40 : vector<8x32xf32>
    %42 = arith.addf %7, %41 : vector<8x32xf32>
    %cst_22 = arith.constant dense<0.000000e+00> : vector<8xf32>
    %43 = vector.multi_reduction <add>, %42, %cst_22 [1] : vector<8x32xf32> to vector<8xf32>
    %44 = vector.shape_cast %43 : vector<8xf32> to vector<8x1xf32>
    %cst_23 = arith.constant 3.200000e+01 : f32
    %45 = vector.broadcast %cst_23 : f32 to vector<8x1xf32>
    %46 = arith.divf %44, %45 : vector<8x1xf32>
    %47 = vector.broadcast %46 : vector<8x1xf32> to vector<8x32xf32>
    %48 = arith.subf %42, %47 : vector<8x32xf32>
    %49 = arith.mulf %48, %48 : vector<8x32xf32>
    %cst_24 = arith.constant dense<0.000000e+00> : vector<8xf32>
    %50 = vector.multi_reduction <add>, %49, %cst_24 [1] : vector<8x32xf32> to vector<8xf32>
    %51 = vector.shape_cast %50 : vector<8xf32> to vector<8x1xf32>
    %cst_25 = arith.constant 3.200000e+01 : f32
    %52 = vector.broadcast %cst_25 : f32 to vector<8x1xf32>
    %53 = arith.divf %51, %52 : vector<8x1xf32>
    %54 = vector.broadcast %46 : vector<8x1xf32> to vector<8x32xf32>
    %55 = arith.subf %42, %54 : vector<8x32xf32>
    %cst_26 = arith.constant 9.99999974E-6 : f32
    %56 = vector.broadcast %cst_26 : f32 to vector<8x1xf32>
    %57 = arith.addf %53, %56 : vector<8x1xf32>
    %58 = math.rsqrt %57 : vector<8x1xf32>
    %59 = vector.broadcast %58 : vector<8x1xf32> to vector<8x32xf32>
    %60 = arith.mulf %55, %59 : vector<8x32xf32>
    %c0_27 = arith.constant 0 : index
    %c0_28 = arith.constant 0 : index
    %61 = vector.load %arg11[%c0_27, %c0_28] : memref<1x32xf32, #tpu.memory_space<vmem>>, vector<1x32xf32>
    %62 = vector.broadcast %61 : vector<1x32xf32> to vector<8x32xf32>
    %63 = arith.mulf %60, %62 : vector<8x32xf32>
    %c0_29 = arith.constant 0 : index
    %c0_30 = arith.constant 0 : index
    %64 = vector.load %arg12[%c0_29, %c0_30] : memref<1x32xf32, #tpu.memory_space<vmem>>, vector<1x32xf32>
    %65 = vector.broadcast %64 : vector<1x32xf32> to vector<8x32xf32>
    %66 = arith.addf %63, %65 : vector<8x32xf32>
    %67 = arith.truncf %66 : vector<8x32xf32> to vector<8x32xbf16>
    %c0_31 = arith.constant 0 : index
    %c0_32 = arith.constant 0 : index
    %68 = vector.load %arg13[%c0_31, %c0_32] : memref<32x64xbf16, #tpu.memory_space<vmem>>, vector<32x64xbf16>
    %cst_33 = arith.constant dense<0.000000e+00> : vector<8x64xf32>
    %69 = tpu.matmul %67, %68, %cst_33 {dimension_numbers = #tpu.dot_dimension_numbers<[1], [0], [0], [1], [0, 0, 1, 1], [], []>} : vector<8x32xbf16>, vector<32x64xbf16>, vector<8x64xf32> -> vector<8x64xf32>
    %c0_34 = arith.constant 0 : index
    %c0_35 = arith.constant 0 : index
    %70 = vector.load %arg14[%c0_34, %c0_35] : memref<1x64xf32, #tpu.memory_space<vmem>>, vector<1x64xf32>
    %71 = vector.broadcast %70 : vector<1x64xf32> to vector<8x64xf32>
    %72 = arith.addf %69, %71 : vector<8x64xf32>
    %cst_36 = arith.constant 0.000000e+00 : f32
    %73 = vector.broadcast %cst_36 : f32 to vector<8x64xf32>
    %74 = arith.maximumf %72, %73 : vector<8x64xf32>
    %75 = arith.truncf %74 : vector<8x64xf32> to vector<8x64xbf16>
    %c0_37 = arith.constant 0 : index
    %c0_38 = arith.constant 0 : index
    %76 = vector.load %arg15[%c0_37, %c0_38] : memref<64x32xbf16, #tpu.memory_space<vmem>>, vector<64x32xbf16>
    %cst_39 = arith.constant dense<0.000000e+00> : vector<8x32xf32>
    %77 = tpu.matmul %75, %76, %cst_39 {dimension_numbers = #tpu.dot_dimension_numbers<[1], [0], [0], [1], [0, 0, 1, 1], [], []>} : vector<8x64xbf16>, vector<64x32xbf16>, vector<8x32xf32> -> vector<8x32xf32>
    %c0_40 = arith.constant 0 : index
    %c0_41 = arith.constant 0 : index
    %78 = vector.load %arg16[%c0_40, %c0_41] : memref<1x32xf32, #tpu.memory_space<vmem>>, vector<1x32xf32>
    %79 = vector.broadcast %78 : vector<1x32xf32> to vector<8x32xf32>
    %80 = arith.addf %77, %79 : vector<8x32xf32>
    %81 = arith.addf %66, %80 : vector<8x32xf32>
    %cst_42 = arith.constant dense<0.000000e+00> : vector<8xf32>
    %82 = vector.multi_reduction <add>, %81, %cst_42 [1] : vector<8x32xf32> to vector<8xf32>
    %83 = vector.shape_cast %82 : vector<8xf32> to vector<8x1xf32>
    %cst_43 = arith.constant 3.200000e+01 : f32
    %84 = vector.broadcast %cst_43 : f32 to vector<8x1xf32>
    %85 = arith.divf %83, %84 : vector<8x1xf32>
    %86 = vector.broadcast %85 : vector<8x1xf32> to vector<8x32xf32>
    %87 = arith.subf %81, %86 : vector<8x32xf32>
    %88 = arith.mulf %87, %87 : vector<8x32xf32>
    %cst_44 = arith.constant dense<0.000000e+00> : vector<8xf32>
    %89 = vector.multi_reduction <add>, %88, %cst_44 [1] : vector<8x32xf32> to vector<8xf32>
    %90 = vector.shape_cast %89 : vector<8xf32> to vector<8x1xf32>
    %cst_45 = arith.constant 3.200000e+01 : f32
    %91 = vector.broadcast %cst_45 : f32 to vector<8x1xf32>
    %92 = arith.divf %90, %91 : vector<8x1xf32>
    %93 = vector.broadcast %85 : vector<8x1xf32> to vector<8x32xf32>
    %94 = arith.subf %81, %93 : vector<8x32xf32>
    %cst_46 = arith.constant 9.99999974E-6 : f32
    %95 = vector.broadcast %cst_46 : f32 to vector<8x1xf32>
    %96 = arith.addf %92, %95 : vector<8x1xf32>
    %97 = math.rsqrt %96 : vector<8x1xf32>
    %98 = vector.broadcast %97 : vector<8x1xf32> to vector<8x32xf32>
    %99 = arith.mulf %94, %98 : vector<8x32xf32>
    %c0_47 = arith.constant 0 : index
    %c0_48 = arith.constant 0 : index
    %100 = vector.load %arg17[%c0_47, %c0_48] : memref<1x32xf32, #tpu.memory_space<vmem>>, vector<1x32xf32>
    %101 = vector.broadcast %100 : vector<1x32xf32> to vector<8x32xf32>
    %102 = arith.mulf %99, %101 : vector<8x32xf32>
    %c0_49 = arith.constant 0 : index
    %c0_50 = arith.constant 0 : index
    %103 = vector.load %arg18[%c0_49, %c0_50] : memref<1x32xf32, #tpu.memory_space<vmem>>, vector<1x32xf32>
    %104 = vector.broadcast %103 : vector<1x32xf32> to vector<8x32xf32>
    %105 = arith.addf %102, %104 : vector<8x32xf32>
    %c0_51 = arith.constant 0 : index
    %c0_52 = arith.constant 0 : index
    %c0_53 = arith.constant 0 : index
    %106 = vector.load %arg19[%c0_51, %c0_52, %c0_53] : memref<1x8x32xf32, #tpu.memory_space<vmem>>, vector<1x8x32xf32>
    %107 = vector.shape_cast %106 : vector<1x8x32xf32> to vector<8x32xf32>
    %108 = vector.shape_cast %105 : vector<8x32xf32> to vector<1x8x32xf32>
    tpu.vector_store %arg19[%c0_51, %c0_52, %c0_53], %108 {strides = array<i32>} : memref<1x8x32xf32, #tpu.memory_space<vmem>>, vector<1x8x32xf32>,
    return
  }
  func.func @transform_0(%arg0: i32, %arg1: i32) -> (i32, i32, i32) {
    %c0_i32 = arith.constant 0 : i32
    %c0_i32_0 = arith.constant 0 : i32
    %c0_i32_1 = arith.constant 0 : i32
    return %arg0, %c0_i32, %c0_i32_0 : i32, i32, i32
  }
  func.func @transform_1(%arg0: i32, %arg1: i32) -> (i32, i32) {
    %c0_i32 = arith.constant 0 : i32
    %c0_i32_0 = arith.constant 0 : i32
    %c0_i32_1 = arith.constant 0 : i32
    return %c0_i32, %c0_i32_0 : i32, i32
  }
  func.func @transform_2(%arg0: i32, %arg1: i32) -> (i32, i32) {
    %c0_i32 = arith.constant 0 : i32
    %c0_i32_0 = arith.constant 0 : i32
    %c0_i32_1 = arith.constant 0 : i32
    return %c0_i32, %c0_i32_0 : i32, i32
  }
  func.func @transform_3(%arg0: i32, %arg1: i32) -> (i32, i32) {
    %c0_i32 = arith.constant 0 : i32
    %c0_i32_0 = arith.constant 0 : i32
    %c0_i32_1 = arith.constant 0 : i32
    return %c0_i32, %c0_i32_0 : i32, i32
  }
  func.func @transform_4(%arg0: i32, %arg1: i32) -> (i32, i32) {
    %c0_i32 = arith.constant 0 : i32
    %c0_i32_0 = arith.constant 0 : i32
    %c0_i32_1 = arith.constant 0 : i32
    return %c0_i32, %c0_i32_0 : i32, i32
  }
  func.func @transform_5(%arg0: i32, %arg1: i32) -> (i32, i32) {
    %c0_i32 = arith.constant 0 : i32
    %c0_i32_0 = arith.constant 0 : i32
    %c0_i32_1 = arith.constant 0 : i32
    return %c0_i32, %c0_i32_0 : i32, i32
  }
  func.func @transform_6(%arg0: i32, %arg1: i32) -> (i32, i32) {
    %c0_i32 = arith.constant 0 : i32
    %c0_i32_0 = arith.constant 0 : i32
    %c0_i32_1 = arith.constant 0 : i32
    return %c0_i32, %c0_i32_0 : i32, i32
  }
  func.func @transform_7(%arg0: i32, %arg1: i32) -> (i32, i32) {
    %c0_i32 = arith.constant 0 : i32
    %c0_i32_0 = arith.constant 0 : i32
    %c0_i32_1 = arith.constant 0 : i32
    return %c0_i32, %c0_i32_0 : i32, i32
  }
  func.func @transform_8(%arg0: i32, %arg1: i32) -> (i32, i32) {
    %c0_i32 = arith.constant 0 : i32
    %c0_i32_0 = arith.constant 0 : i32
    %c0_i32_1 = arith.constant 0 : i32
    return %c0_i32, %c0_i32_0 : i32, i32
  }
  func.func @transform_9(%arg0: i32, %arg1: i32) -> (i32, i32) {
    %c0_i32 = arith.constant 0 : i32
    %c0_i32_0 = arith.constant 0 : i32
    %c0_i32_1 = arith.constant 0 : i32
    return %c0_i32, %c0_i32_0 : i32, i32
  }
  func.func @transform_10(%arg0: i32, %arg1: i32) -> (i32, i32) {
    %c0_i32 = arith.constant 0 : i32
    %c0_i32_0 = arith.constant 0 : i32
    %c0_i32_1 = arith.constant 0 : i32
    return %c0_i32, %c0_i32_0 : i32, i32
  }
  func.func @transform_11(%arg0: i32, %arg1: i32) -> (i32, i32) {
    %c0_i32 = arith.constant 0 : i32
    %c0_i32_0 = arith.constant 0 : i32
    %c0_i32_1 = arith.constant 0 : i32
    return %c0_i32, %c0_i32_0 : i32, i32
  }
  func.func @transform_12(%arg0: i32, %arg1: i32) -> (i32, i32) {
    %c0_i32 = arith.constant 0 : i32
    %c0_i32_0 = arith.constant 0 : i32
    %c0_i32_1 = arith.constant 0 : i32
    return %c0_i32, %c0_i32_0 : i32, i32
  }
  func.func @transform_13(%arg0: i32, %arg1: i32) -> (i32, i32) {
    %c0_i32 = arith.constant 0 : i32
    %c0_i32_0 = arith.constant 0 : i32
    %c0_i32_1 = arith.constant 0 : i32
    return %c0_i32, %c0_i32_0 : i32, i32
  }
  func.func @transform_14(%arg0: i32, %arg1: i32) -> (i32, i32) {
    %c0_i32 = arith.constant 0 : i32
    %c0_i32_0 = arith.constant 0 : i32
    %c0_i32_1 = arith.constant 0 : i32
    return %c0_i32, %c0_i32_0 : i32, i32
  }
  func.func @transform_15(%arg0: i32, %arg1: i32) -> (i32, i32) {
    %c0_i32 = arith.constant 0 : i32
    %c0_i32_0 = arith.constant 0 : i32
    %c0_i32_1 = arith.constant 0 : i32
    return %c0_i32, %c0_i32_0 : i32, i32
  }
  func.func @transform_16(%arg0: i32, %arg1: i32) -> (i32, i32) {
    %c0_i32 = arith.constant 0 : i32
    %c0_i32_0 = arith.constant 0 : i32
    %c0_i32_1 = arith.constant 0 : i32
    return %c0_i32, %c0_i32_0 : i32, i32
  }
  func.func @transform_17(%arg0: i32, %arg1: i32) -> (i32, i32, i32) {
    %c0_i32 = arith.constant 0 : i32
    %c0_i32_0 = arith.constant 0 : i32
    return %arg0, %arg1, %c0_i32 : i32, i32, i32
  }
}

</mosaic_0001>

<bundles_post_ra>
// kernel: tpu_custom_call.1
= control target key start
LH: loop header
LB: loop body
LE: loop exit
PB: predicated region body
PF: predicated region fallthrough
CT: control target
= control target key end

     0   :  { %s2392_s0 = inlined_call_operand.vmem [shape: f32[2,8,32], index: 0, kind: input, shape index: {}]   ;;  %s2393_s1 = inlined_call_operand.vmem [shape: bf16[32,32], index: 1, kind: input, shape index: {}]   ;;  %s2394_s2 = inlined_call_operand.vmem [shape: bf16[32,32], index: 2, kind: input, shape index: {}]   ;;  %s2395_s3 = inlined_call_operand.hbm [shape: bf16[32,32], index: 3, kind: input, shape index: {}]   ;;  %s2396_s4 = inlined_call_operand.vmem [shape: f32[1,32], index: 4, kind: input, shape index: {}]   ;;  %s2397_s5 = inlined_call_operand.vmem [shape: f32[1,32], index: 5, kind: input, shape index: {}]   ;;  %s2398_s6 = inlined_call_operand.vmem [shape: f32[1,32], index: 6, kind: input, shape index: {}]   ;;  %s2399_s7 = inlined_call_operand.hbm [shape: bf16[32,32], index: 7, kind: input, shape index: {}]   ;;  %s2400_s8 = inlined_call_operand.vmem [shape: f32[1,32], index: 8, kind: input, shape index: {}]   ;;  %s2401_s9 = inlined_call_operand.vmem [shape: f32[1,32], index: 9, kind: input, shape index: {}]   ;;  %s2402_s10 = inlined_call_operand.vmem [shape: f32[1,32], index: 10, kind: input, shape index: {}]   ;;  %s2403_s11 = inlined_call_operand.hbm [shape: bf16[32,64], index: 11, kind: input, shape index: {}]   ;;  %s2404_s12 = inlined_call_operand.vmem [shape: f32[1,64], index: 12, kind: input, shape index: {}]   ;;  %s2405_s13 = inlined_call_operand.vmem [shape: bf16[64,32], index: 13, kind: input, shape index: {}]   ;;  %s2406_s14 = inlined_call_operand.vmem [shape: f32[1,32], index: 14, kind: input, shape index: {}]   ;;  %s2407_s15 = inlined_call_operand.vmem [shape: f32[1,32], index: 15, kind: input, shape index: {}]   ;;  %s2408_s16 = inlined_call_operand.vmem [shape: f32[1,32], index: 16, kind: input, shape index: {}]   ;;  %s2409_s17 = inlined_call_operand.hbm [shape: f32[2,8,32], index: 17, kind: output, shape index: {}]  }
   0x1   :  { %2421 = sst [smem:[#allocation22_spill]] %s2392_s0 }
   0x2   :  { %2422 = sst [smem:[#allocation23_spill]] %s2393_s1 }
   0x3   :  { %2423 = sst [smem:[#allocation24_spill]] %s2394_s2 }
   0x4   :  { %2424 = sst [smem:[#allocation25_spill]] %s2399_s7 }
   0x5   :  { %2425 = sst [smem:[#allocation26_spill]] %s2407_s15 }
   0x6   :  { %2426 = sst [smem:[#allocation27_spill]] %s2408_s16 }
   0x7   :  { %2427 = sst [smem:[#allocation28_spill]] %s2409_s17 }
   0x8   :  { %22 = vsyncpa [#allocation5], 0 }
   0x9   :  { %23 = vsyncpa [#allocation8], 0 }
   0xa   :  { %24 = vsyncpa [#allocation6], 0 }
   0xb   :  { %26 = vsyncpa [#allocation6 + $0x1], 0  ;;  %s2059_s24 = smov 0   ;;  %s2061_s25 = smov 0  }
   0xc   :  { %s2063_s26 = smov 0   ;;  %s2065_s27 = smov 0  }
   0xd   :  { %s2067_s28 = smov 0   ;;  %s2069_s29 = smov 0  }
   0xe LB: > { %2428 = sst [smem:[#allocation14_spill]] %s1933_s24  ;;  %s1547_s0 = sadd.s32 4294967295, %s1953_s29   ;;  %s1953_s29 = sphi %s2069_s29, %s32_s29   ;;  %s1949_s28 = sphi %s2067_s28, %s2456_s28   ;;  %s1945_s27 = sphi %s2065_s27, %s2455_s27   ;;  %s1941_s26 = sphi %s2063_s26, %s2454_s26   ;;  %s1937_s25 = sphi %s2061_s25, %s2458_s25   ;;  %s1933_s24 = sphi %s2059_s24, %s2457_s24  }
   0xf   : > { %2429 = sst [smem:[#allocation15_spill]] %s1941_s26  ;;  %s1548_s30 = sadd.s32 4294967294, %s1953_s29  }
  0x10   : > { %2430 = sst [smem:[#allocation16_spill]] %s1949_s28  ;;  %s44_s18 = sadd.s32 1, %s1949_s28 }
  0x11   : > { %2431 = sst [smem:[#allocation17_spill]] %s1953_s29  ;;  %s415_s19 = sadd.s32 1, %s1941_s26 }
  0x12   : > { %p46_p0 = scmp.ge.s32.totalorder %s44_s18, 2  ;;  %p425_p1 = scmp.ne.s32.totalorder %s1941_s26, %s1937_s25 }
  0x13   : > { %p426_p2 = scmp.eq.s32.totalorder %s1547_s0, 1  ;;  %p431_p3 = scmp.ne.s32.totalorder %s1937_s25, %s1933_s24 }
  0x14   : > { %s2460_s18 = smov (%p46_p0, %s44_s18), 0  ;;  %p432_p5 = scmp.eq.s32.totalorder %s1548_s30, 1 }
  0x15   : > { %2432 = sst [smem:[#allocation18_spill]] %s2460_s18  ;;  %p2099_p4 = por %p426_p2, %p425_p1 }
  0x16   : > { %s410_s20 = ssub.s32 %s1949_s28, %s2460_s18  ;;  %p1549_p6 = scmp.ge.s32.totalorder %s1953_s29, 1 }
  0x17   : > { %s2433_s1 = scalar_select %p2099_p4, 1, 0 }
  0x18   : > { %p413_p7 = scmp.eq.s32.totalorder %s410_s20, 0  ;;  %p2106_p8 = por %p432_p5, %p431_p3 }
  0x19   : > { %2434 = sst [smem:[#allocation19_spill]] %s2433_s1  ;;  %p439_p9 = scmp.lt.s32.totalorder %s1953_s29, 3 }
  0x1a   : > { %s2435_s21 = scalar_select %p2106_p8, 1, 0 }
  0x1b   : > { %s2112_s22 = scalar_select %p413_p7, %s1941_s26, %s415_s19  }
  0x1c   : > { %2436 = sst [smem:[#allocation20_spill]] %s2435_s21  ;;  %p2114_p10 = pnand %p1549_p6, %p439_p9 }
  0x1d   : > { %2437 = sst [smem:[#allocation21_spill]] %s2112_s22  ;;  %p2118_p11 = scmp.eq.s32.totalorder %s1547_s0, 0 }
  0x1e   : > { %p1662_p12 = pneg %p2114_p10  ;;  %s2440_s7 = sld [smem:[#allocation25_spill]] }
  0x1f   : > { %s1955_s28 = smov [#allocation7]   ;;  %s1956_s22 = smov 64  }
  0x20   : > { %p2129_p13 = pnand %p2118_p11, %p1662_p12  ;;  %s481_s0 = sshll.u32 %s1955_s28, 4  ;;  %s482_s0 = int_to_ptr.vmem [resolvable:$true] %s481_s0 }
  0x21   : > { %s1957_s26 = smov 4   ;;  %s456_s30 = sshll.u32 %s2395_s3, 4  ;;  %s457_s30 = int_to_ptr.hbm [resolvable:$true] %s456_s30 }
  0x22   : > { %s1958_s20 = smov [#allocation4]   ;;  %s502_s17 = sshll.u32 %s2403_s11, 4  ;;  %s503_s17 = int_to_ptr.hbm [resolvable:$true] %s502_s17 }
  0x23   : > { %s1959_s28 = smov [#allocation9]  }
  0x24   : > { %s479_s18 = sshll.u32 %s2440_s7, 4  ;;  %s458_s7 = sshll.u32 %s1958_s20, 4  ;;  %s480_s18 = int_to_ptr.hbm [resolvable:$true] %s479_s18  ;;  %s459_s7 = int_to_ptr.vmem [resolvable:$true] %s458_s7 }
  0x25   : > { %1668 = dma.hbm_to_vmem [thread:$0]  (!%p2129_p13), %s480_s18, 256, %s482_s0, [#allocation8], %s1956_s22, %s1956_s22, %s1957_s26  }
  0x26   : > { %1665 = dma.hbm_to_vmem [thread:$0]  (!%p2129_p13), %s457_s30, 256, %s459_s7, [#allocation5], %s1956_s22, %s1956_s22, %s1957_s26  }
  0x27   : > { %s504_s15 = sshll.u32 %s1959_s28, 4  ;;  %542 = sbr.rel (%p2114_p10) target bundleno = 1973 (0x7b5), region = 88  ;;  %s505_s15 = int_to_ptr.vmem [resolvable:$true] %s504_s15 }
  0x28   : > { %1671 = dma.hbm_to_vmem [thread:$0]  (!%p2129_p13), %s503_s17, 256, %s505_s15, [#allocation8], %s1956_s22, %s1956_s22, %s1957_s26  }
  0x2c   : > { %1920 = dma.done.wait (%p2118_p11), [#allocation5], 256  }
  0x2d   : > { %1922 = vsyncadd (%p2118_p11), [#allocation5], 4294967040 }
  0x2e   : > { %1924 = dma.done.wait (%p2118_p11), [#allocation8], 512  }
  0x2f   : > { %1926 = vsyncadd (%p2118_p11), [#allocation8], 4294966784  ;;  %p604_p0 = scmp.lt.s32.totalorder %s1945_s27, 1  ;;  %s2442_s26 = sld [smem:[#allocation22_spill]]  ;;  %vm635_vm0 = vcmask 261120   ;;  %vm687_vm1 = vcmask 60416  }
  0x30   : > { %s2443_s21 = sld [smem:[#allocation23_spill]]  ;;  %v1746_v6 = vld [vmem:[%s2397_s5] ss:$0 sm:$0xff]  ;;  %s1960_s16 = smov 112   ;;  %vm897_vm2 = vcmask 64512   ;;  %v1637_v19 = vld [vmem:[#allocation4 + $0x8] sm:$0xff] }
  0x31   : > { %s605_s7 = scalar_select %p604_p0, %s1945_s27, 1  ;;  %v1745_v9 = vld [vmem:[%s2396_s4] ss:$0 sm:$0xff]  ;;  %678 = vmatpush.bf16.msra.mxu1 %v1637_v19  ;;  %v1963_v26 = vmov 1983009808   ;;  %vm775_vm3 = vcmask 1047556  }
  0x32   : > { %s2444_s2 = sld [smem:[#allocation24_spill]]  ;;  %s1961_s17 = smov 104   ;;  %v1636_v20 = vld [vmem:[#allocation4] sm:$0xff]  ;;  %v780_v27 = vunpack.c.l.s4 %v1963_v26  ;;  %v1964_v35 = vmov 1934713408   ;;  %vm1025_vm4 = vcmask 1043456  }
  0x33   : > { %s1559_s15 = sshll.u32 %s605_s7, 3  ;;  %v804_v36 = vunpack.c.l.s4 %v1964_v35  ;;  %s1965_s1 = smov 16   ;;  %vm1222_vm5 = vcmask 130048   ;;  %vm1224_vm6 = vcmask 195584   ;;  %vm1378_vm11 = vcmask 523264  }
  0x34   : > { %v2197_v32 = vunpack.c.0.s8 %v780_v27  ;;  %s1966_s22 = smov 24   ;;  %s1967_s23 = smov 8  }
  0x35   : > { %s607_s29 = scalar_lea.vmem %s2442_s26, %s1559_s15  ;;  %s1962_s26 = smov 120   ;;  %679 = vmatpush.bf16.msra.mxu1 %v1636_v20  ;;  %v2203_v42 = vunpack.c.0.s8 %v804_v36 }
  0x36   : > { %v1639_v0 = vld [vmem:[%s2443_s21 + $0x8] sm:$0xff]  ;;  %v1638_v1 = vld [vmem:[%s2443_s21] sm:$0xff]  ;;  %s601_s0 = sand.u32 1, %s1937_s25   ;;  %s1631_s20 = sshll.u32 %s1945_s27, 3 }
  0x37   : > { %v2166_v2 = vld [vmem:[%s607_s29] sm:$0xff]  ;;  %756 = vmatpush.bf16.msra.mxu2 %v1639_v0  ;;  %s1558_s30 = sshll.u32 %s601_s0, 3  ;;  %s2445_s15 = sld [smem:[#allocation26_spill]] }
  0x38   : > { %v1635_v3 = vld [vmem:[%s2444_s2 + $0x8] sm:$0xff]  ;;  %v1634_v4 = vld [vmem:[%s2444_s2] sm:$0xff]  ;;  %v725_v5 = vpack.c.bf16 %v2166_v2, %v2166_v2  ;;  %s2449_s24 = sld [smem:[#allocation27_spill]]  ;;  %s603_s19 = scalar_lea.vmem [#allocation10], %s1558_s30 }
  0x39   : > { %645 = vmatpush.bf16.msra.mxu0 %v1635_v3  ;;  %s1443_s27 = sshll.u32 %s603_s19, 4  ;;  %s1430_s28 = scalar_lea.sflag [#allocation6], %s601_s0  ;;  %s1444_s27 = int_to_ptr.vmem [resolvable:$true] %s1443_s27 }
  0x3a   : > { %1577 = vmatmul.msk.bf16.vlgmr.msra.gmra.mxu1 %vm635_vm0, %v725_v5 }
  0x3b   : > { %757 = vmatpush.bf16.msra.mxu2 %v1638_v1 }
  0x3d   : > { %646 = vmatpush.bf16.msra.mxu0 %v1634_v4 }
  0x3e   : > { %1586 = vmatmul.msk.bf16.vlgmr.msra.gmra.mxu2 %vm635_vm0, %v725_v5 }
  0x40   : > { %1568 = vmatmul.msk.bf16.vlgmr.msra.gmra.mxu0 %vm635_vm0, %v725_v5 }
  0xbd   : > { %v648_v7 = vpop.f32.mrf.mxu0 }
  0xbe   : > { %v649_v8 = vadd.f32 %v1746_v6, %v648_v7 }
  0xc0   : > { %v685_v10 = vpack.c.bf16 %v649_v8, %v649_v8 }
  0xc1   : > { %v759_v11 = vpop.f32.mrf.mxu2 }
  0xc2   : > { %688 = vst.msk [vmem:[#allocation2] sm:$0xf] %vm687_vm1, %v685_v10  ;;  %702 = vrot.lane.b32.xlu2 %v685_v10, %s1960_s16  ;;  %v760_v12 = vadd.f32 %v1745_v9, %v759_v11 }
  0xc4   : > { %v763_v13 = vmul.f32 0.35355338, %v760_v12 }
  0xc5   : > { %v650_v14 = vpop.f32.mrf.mxu0 }
  0xc6   : > { %771 = vrot.lane.b32.xlu1 %v763_v13, %s1961_s17  ;;  %765 = vrot.lane.b32.xlu0 %v763_v13, %s1962_s26  ;;  %v777_v38 = vrot.slane %v763_v13, 4 }
  0xc9   : > { %v889_v15 = vld [vmem:[#allocation2] sm:$0xf]  ;;  %v761_v16 = vpop.f32.mrf.mxu2 }
  0xca   : > { %691 = vrot.lane.b32.xlu2 %v685_v10, %s1962_s26  ;;  %v902_v17 = vsel %vm897_vm2, %v889_v15, 0 }
  0xcb   : > { %911 = vmatpush.bf16.xpose.msra.mxu3 %v902_v17 }
  0xce   : > { %768 = vrot.lane.b32.xlu0 %v763_v13, %s1960_s16  ;;  %712 = vrot.lane.b32.xlu1 %v685_v10, %s1961_s17 }
 0x11c   : > { %v703_v18 = vpop.permute.xlu2 %702 }
 0x11d   : > { %706 = vst.msk [vmem:[#allocation2 + $0x8] sm:$0xf] %vm687_vm1, %v703_v18 }
 0x124   : > { %v692_v21 = vpop.permute.xlu2 %691  ;;  %v891_v22 = vld [vmem:[#allocation2 + $0x8] sm:$0xf] }
 0x125   : > { %695 = vst.msk [vmem:[#allocation2 + $0x4] sm:$0xf] %vm687_vm1, %v692_v21  ;;  %v940_v24 = vsel %vm897_vm2, %v891_v22, 0 }
 0x126   : > { %949 = vmatpush.bf16.xpose.msrb.mxu1 %v940_v24 }
 0x12c   : > { %v890_v23 = vld [vmem:[#allocation2 + $0x4] sm:$0xf] }
 0x12d   : > { %v921_v25 = vsel %vm897_vm2, %v890_v23, 0 }
 0x12e   : > { %930 = vmatpush.bf16.xpose.msrb.mxu0 %v921_v25 }
 0x138   : > { %v772_v28 = vpop.permute.xlu1 %771  ;;  %v766_v29 = vpop.permute.xlu0 %765 }
 0x139   : > { %v787_v30 = vrot.slane %v772_v28, 4  ;;  %v789_v31 = vrot.slane %v766_v29, 4 }
 0x13b   : > { %v790_v33 = vsel %vm775_vm3, %v772_v28, %v789_v31  ;;  %v788_v34 = vsel %vm775_vm3, %v787_v30, %v766_v29 }
 0x13c   : > { %v798_v37 = vperm.slane %v790_v33, %v2197_v32  ;;  %v794_v39 = vperm.slane %v788_v34, %v2197_v32 }
 0x13e   : > { %v811_v45 = vrot.slane %v798_v37, 4  ;;  %v799_v48 = vrot.slane %v794_v39, 4 }
 0x140   : > { %v769_v40 = vpop.permute.xlu0 %768  ;;  %v713_v41 = vpop.permute.xlu1 %712 }
 0x141   : > { %v774_v43 = vrot.slane %v769_v40, 4  ;;  %v778_v44 = vsel %vm775_vm3, %v769_v40, %v777_v38  ;;  %716 = vst.msk [vmem:[#allocation2 + $0xc] sm:$0xf] %vm687_vm1, %v713_v41 }
 0x142   : > { %v786_v46 = vperm.slane %v778_v44, %v2197_v32  ;;  %v681_v44 = vpop.f32.mrf.mxu1 }
 0x143   : > { %v776_v47 = vsel %vm775_vm3, %v774_v43, %v763_v13  ;;  %v1747_v43 = vld [vmem:[%s2398_s6] ss:$0 sm:$0xff] }
 0x144   : > { %v782_v49 = vperm.slane %v776_v47, %v2197_v32  ;;  %v812_v50 = vsel %vm775_vm3, %v811_v45, %v786_v46  ;;  %v813_v51 = vrot.slane %v786_v46, 4  ;;  %v682_v45 = vadd.f32 %v1747_v43, %v681_v44 }
 0x145   : > { %v818_v52 = vperm.slane %v812_v50, %v2203_v42 }
 0x146   : > { %v800_v53 = vsel %vm775_vm3, %v799_v48, %v782_v49  ;;  %v801_v54 = vrot.slane %v782_v49, 4  ;;  %v814_v55 = vsel %vm775_vm3, %v798_v37, %v813_v51  ;;  %v686_v46 = vpack.c.bf16 %v682_v45, %v682_v45 }
 0x147   : > { %v806_v56 = vperm.slane %v800_v53, %v2203_v42  ;;  %v822_v57 = vperm.slane %v814_v55, %v2203_v42  ;;  %v827_v61 = vrot.slane %v818_v52, 4 }
 0x148   : > { %v802_v58 = vsel %vm775_vm3, %v794_v39, %v801_v54  ;;  %v892_v59 = vld [vmem:[#allocation2 + $0xc] sm:$0xf]  ;;  %689 = vst.msk [vmem:[#allocation3] sm:$0xf] %vm687_vm1, %v686_v46 }
 0x149   : > { %v810_v60 = vperm.slane %v802_v58, %v2203_v42  ;;  %v829_v62 = vrot.slane %v822_v57, 4  ;;  %v959_v63 = vsel %vm897_vm2, %v892_v59, 0  ;;  %v823_v0 = vrot.slane %v806_v56, 4 }
 0x14a   : > { %968 = vmatpush.bf16.xpose.msrb.mxu2 %v959_v63  ;;  %v828_v8 = vsel %vm775_vm3, 0.0, %v827_v61  ;;  %v683_v47 = vpop.f32.mrf.mxu1 }
 0x14b   : > { %v825_v1 = vrot.slane %v810_v60, 4  ;;  %v830_v3 = vsel %vm775_vm3, 0.0, %v829_v62  ;;  %v842_v4 = vsel %vm775_vm3, %v829_v62, %v818_v52  ;;  %v824_v14 = vsel %vm775_vm3, 0.0, %v823_v0 }
 0x14c   : > { %v846_v5 = vperm.slane %v842_v4, %v2197_v32  ;;  %v847_v6 = vrot.slane %v830_v3, 4 }
 0x14d   : > { %v826_v7 = vsel %vm775_vm3, 0.0, %v825_v1  ;;  %v831_v9 = vsel %vm775_vm3, %v825_v1, %v806_v56 }
 0x14e   : > { %v835_v10 = vperm.slane %v831_v9, %v2197_v32  ;;  %v836_v11 = vrot.slane %v826_v7, 4  ;;  %v848_v12 = vsel %vm775_vm3, %v847_v6, %v828_v8  ;;  %v867_v13 = vrot.slane %v846_v5, 4 }
 0x14f   : > { %v852_v15 = vperm.slane %v848_v12, %v2197_v32  ;;  %v893_v48 = vld [vmem:[#allocation3] sm:$0xf] }
 0x150   : > { %v837_v16 = vsel %vm775_vm3, %v836_v11, %v824_v14  ;;  %v855_v17 = vrot.slane %v835_v10, 4  ;;  %v1027_v49 = vsel %vm1025_vm4, %v893_v48, 0 }
 0x151   : > { %v841_v18 = vperm.slane %v837_v16, %v2197_v32  ;;  %v868_v19 = vsel %vm775_vm3, %v852_v15, %v867_v13  ;;  %v865_v20 = vrot.slane %v852_v15, 4  ;;  %1036 = vmatpush.bf16.msrb.mxu3 %v1027_v49 }
 0x152   : > { %v876_v21 = vperm.slane %v868_v19, %v2203_v42 }
 0x153   : > { %v856_v22 = vsel %vm775_vm3, %v841_v18, %v855_v17  ;;  %v853_v23 = vrot.slane %v841_v18, 4  ;;  %v866_v24 = vsel %vm775_vm3, %v865_v20, %v846_v5 }
 0x154   : > { %v864_v25 = vperm.slane %v856_v22, %v2203_v42  ;;  %v881_v26 = vrot.slane %v876_v21, 4  ;;  %v872_v27 = vperm.slane %v866_v24, %v2203_v42 }
 0x155   : > { %v854_v28 = vsel %vm775_vm3, %v853_v23, %v835_v10 }
 0x156   : > { %v882_v29 = vsel %vm775_vm3, %v881_v26, %v864_v25  ;;  %v860_v30 = vperm.slane %v854_v28, %v2203_v42  ;;  %v877_v31 = vrot.slane %v872_v27, 4  ;;  %v883_v33 = vrot.slane %v864_v25, 4 }
 0x157   : > { %v887_v34 = vpack.c.bf16 %v882_v29, %v882_v29 }
 0x158   : > { %v878_v35 = vsel %vm775_vm3, %v877_v31, %v860_v30  ;;  %v879_v36 = vrot.slane %v860_v30, 4  ;;  %v884_v37 = vsel %vm775_vm3, %v876_v21, %v883_v33 }
 0x159   : > { %1589 = vmatmul.msk.bf16.vlgmr.msrb.gmra.mxu1 %vm897_vm2, %v887_v34  ;;  %v885_v38 = vpack.c.bf16 %v878_v35, %v878_v35  ;;  %v888_v39 = vpack.c.bf16 %v884_v37, %v884_v37 }
 0x15a   : > { %v880_v40 = vsel %vm775_vm3, %v872_v27, %v879_v36 }
 0x15b   : > { %1587 = vmatmul.msk.bf16.vlgmr.msra.gmra.mxu3 %vm897_vm2, %v885_v38  ;;  %1590 = vmatmul.msk.bf16.vlgmr.msrb.gmra.mxu2 %vm897_vm2, %v888_v39  ;;  %v886_v41 = vpack.c.bf16 %v880_v40, %v880_v40 }
 0x15d   : > { %1588 = vmatmul.msk.bf16.vlgmr.msrb.gmra.mxu0 %vm897_vm2, %v886_v41 }
 0x1d6   : > { %v951_v50 = vpop.f32.mrf.mxu1 }
 0x1d7   : > { %v980_v51 = vsel %vm897_vm2, %v951_v50, -inf }
 0x1d8   : > { %981 = vmax.xlane.f32.xlu2 %v980_v51 }
 0x1da   : > { %v932_v52 = vpop.f32.mrf.mxu0 }
 0x1db   : > { %v977_v56 = vsel %vm897_vm2, %v932_v52, -inf }
 0x1de   : > { %v913_v53 = vpop.f32.mrf.mxu3  ;;  %v953_v54 = vpop.f32.mrf.mxu1 }
 0x1df   : > { %v970_v55 = vpop.f32.mrf.mxu2  ;;  %v974_v57 = vsel %vm897_vm2, %v913_v53, -inf }
 0x1e0   : > { %978 = vmax.xlane.f32.xlu2 %v977_v56  ;;  %v983_v58 = vsel %vm897_vm2, %v970_v55, -inf  ;;  %975 = vmax.xlane.f32.xlu0 %v974_v57 }
 0x1e1   : > { %984 = vmax.xlane.f32.xlu1 %v983_v58 }
 0x1e2   : > { %v934_v59 = vpop.f32.mrf.mxu0 }
 0x1e6   : > { %v915_v60 = vpop.f32.mrf.mxu3 }
 0x1e7   : > { %v972_v61 = vpop.f32.mrf.mxu2 }
 0x1f4   : > { %717 = vrot.lane.b32.xlu0 %v686_v46, %s1961_s17 }
 0x1fc   : > { %697 = vrot.lane.b32.xlu0 %v686_v46, %s1962_s26  ;;  %s2446_s26 = sld [smem:[#allocation28_spill]] }
 0x202   : > { %s2447_s18 = smov %s2446_s26  ;;  %s1441_s29 = scalar_lea.hbm %s2446_s26, %s1631_s20 }
 0x203   : > { %s1445_s2 = sshll.u32 %s1441_s29, 4  ;;  %s1887_s30 = scalar_lea.hbm %s2447_s18, 16  ;;  %s1446_s2 = int_to_ptr.hbm [resolvable:$true] %s1445_s2 }
 0x204   : > { %s1881_s7 = sshra.s32 %s1446_s2, 4  ;;  %s1882_s7 = int_to_ptr.hbm [resolvable:$true] %s1881_s7 }
 0x205   : > { %s1883_s20 = scalar_lea.hbm %s1882_s7, 8  ;;  %p1888_p5 = scmp.lt.s32.totalorder %s1882_s7, %s2447_s18 }
 0x206   : > { %p1884_p1 = scmp.ne.s32.totalorder %s1882_s7, %s1883_s20  ;;  %p1889_p6 = scmp.lt.s32.totalorder %s1887_s30, %s1883_s20 }
 0x208   : > { %p1885_p2 = pnand %p1884_p1, %p2099_p4  ;;  %p1890_p7 = por %p1889_p6, %p1888_p5 }
 0x20a   : > { %p1886_p3 = pneg %p1885_p2 }
 0x20c   : > { %p1891_p9 = pnand %p1890_p7, %p1886_p3 }
 0x24b   : > { %v982_v62 = vpop.xlane.xlu2 %981 }
 0x24c   : > { %v988_v63 = vsub.f32 %v951_v50, %v982_v62 }
 0x24e   : > { %v994_v0 = vmul.f32 1.442695, %v988_v63 }
 0x250   : > { %1755 = vpow2.f32 %v994_v0 }
 0x253   : > { %v976_v1 = vpop.xlane.xlu0 %975  ;;  %v979_v3 = vpop.xlane.xlu2 %978 }
 0x254   : > { %v985_v4 = vpop.xlane.xlu1 %984  ;;  %v986_v5 = vsub.f32 %v913_v53, %v976_v1  ;;  %v987_v9 = vsub.f32 %v932_v52, %v979_v3 }
 0x255   : > { %v989_v6 = vsub.f32 %v970_v55, %v985_v4 }
 0x256   : > { %v1756_v7 = vpop.eup %1755  ;;  %v990_v8 = vmul.f32 1.442695, %v986_v5  ;;  %v992_v12 = vmul.f32 1.442695, %v987_v9 }
 0x257   : > { %v996_v10 = vmul.f32 1.442695, %v989_v6  ;;  %v1004_v11 = vsel %vm897_vm2, %v1756_v7, 0.0 }
 0x258   : > { %1005 = vadd.xlane.f32.xlu2 %v1004_v11 }
 0x259   : > { %1757 = vpow2.f32 %v996_v10 }
 0x25a   : > { %1759 = vpow2.f32 %v990_v8 }
 0x25b   : > { %1761 = vpow2.f32 %v992_v12 }
 0x25f   : > { %v1758_v13 = vpop.eup %1757 }
 0x260   : > { %v1760_v14 = vpop.eup %1759  ;;  %v1007_v15 = vsel %vm897_vm2, %v1758_v13, 0.0 }
 0x261   : > { %1008 = vadd.xlane.f32.xlu2 %v1007_v15  ;;  %v998_v16 = vsel %vm897_vm2, %v1760_v14, 0.0  ;;  %v1762_v17 = vpop.eup %1761 }
 0x262   : > { %999 = vadd.xlane.f32.xlu1 %v998_v16  ;;  %v1001_v19 = vsel %vm897_vm2, %v1762_v17, 0.0 }
 0x266   : > { %v718_v18 = vpop.permute.xlu0 %717 }
 0x267   : > { %721 = vst.msk [vmem:[#allocation3 + $0xc] sm:$0xf] %vm687_vm1, %v718_v18 }
 0x269   : > { %1002 = vadd.xlane.f32.xlu2 %v1001_v19 }
 0x26e   : > { %v698_v20 = vpop.permute.xlu0 %697  ;;  %v896_v21 = vld [vmem:[#allocation3 + $0xc] sm:$0xf] }
 0x26f   : > { %701 = vst.msk [vmem:[#allocation3 + $0x4] sm:$0xf] %vm687_vm1, %v698_v20  ;;  %v1084_v22 = vsel %vm1025_vm4, %v896_v21, 0 }
 0x270   : > { %1093 = vmatpush.bf16.msra.mxu2 %v1084_v22 }
 0x276   : > { %v894_v23 = vld [vmem:[#allocation3 + $0x4] sm:$0xf] }
 0x277   : > { %v1046_v24 = vsel %vm1025_vm4, %v894_v23, 0 }
 0x278   : > { %1055 = vmatpush.bf16.msra.mxu0 %v1046_v24 }
 0x27b   : > { %707 = vrot.lane.b32.xlu1 %v686_v46, %s1960_s16 }
 0x2cb   : > { %v1006_v25 = vpop.xlane.xlu2 %1005 }
 0x2d4   : > { %v1009_v26 = vpop.xlane.xlu2 %1008 }
 0x2d5   : > { %1763 = vrcp.f32 %v1009_v26  ;;  %v1000_v27 = vpop.xlane.xlu1 %999 }
 0x2d6   : > { %1765 = vrcp.f32 %v1000_v27 }
 0x2db   : > { %v1764_v28 = vpop.eup %1763 }
 0x2dc   : > { %v1766_v29 = vpop.eup %1765  ;;  %v1017_v30 = vmul.f32 %v1764_v28, %v1758_v13  ;;  %v1003_v31 = vpop.xlane.xlu2 %1002 }
 0x2dd   : > { %v1014_v33 = vmul.f32 %v1766_v29, %v1760_v14  ;;  %1767 = vrcp.f32 %v1003_v31 }
 0x2de   : > { %v1021_v34 = vpack.c.bf16 %v1017_v30, %v1017_v30  ;;  %1769 = vrcp.f32 %v1006_v25 }
 0x2df   : > { %v1018_v35 = vpack.c.bf16 %v1014_v33, %v1014_v33 }
 0x2e0   : > { %1594 = vmatmul.msk.bf16.vlgmr.msra.gmra.mxu2 %vm897_vm2, %v1021_v34 }
 0x2e1   : > { %1591 = vmatmul.msk.bf16.vlgmr.msrb.gmra.mxu3 %vm897_vm2, %v1018_v35 }
 0x2e3   : > { %v1768_v36 = vpop.eup %1767 }
 0x2e4   : > { %v1015_v37 = vmul.f32 %v1768_v36, %v1762_v17  ;;  %v1770_v40 = vpop.eup %1769 }
 0x2e5   : > { %v1016_v41 = vmul.f32 %v1770_v40, %v1756_v7 }
 0x2e6   : > { %v1019_v38 = vpack.c.bf16 %v1015_v37, %v1015_v37 }
 0x2e7   : > { %v1020_v45 = vpack.c.bf16 %v1016_v41, %v1016_v41 }
 0x2e8   : > { %1592 = vmatmul.msk.bf16.vlgmr.msra.gmra.mxu0 %vm897_vm2, %v1019_v38 }
 0x2ed   : > { %v708_v39 = vpop.permute.xlu1 %707 }
 0x2ee   : > { %711 = vst.msk [vmem:[#allocation3 + $0x8] sm:$0xf] %vm687_vm1, %v708_v39 }
 0x2f5   : > { %v895_v43 = vld [vmem:[#allocation3 + $0x8] sm:$0xf] }
 0x2f6   : > { %v1065_v44 = vsel %vm1025_vm4, %v895_v43, 0 }
 0x2f7   : > { %1074 = vmatpush.bf16.msra.mxu1 %v1065_v44 }
 0x2fa   : > { %1593 = vmatmul.msk.bf16.vlgmr.msra.gmra.mxu1 %vm897_vm2, %v1020_v45 }
 0x363   : > { %v1095_v46 = vpop.f32.mrf.mxu2 }
 0x364   : > { %v1038_v47 = vpop.f32.mrf.mxu3  ;;  %v1111_v53 = vrot.slane %v1095_v46, 4 }
 0x365   : > { %v1057_v48 = vpop.f32.mrf.mxu0  ;;  %v1101_v57 = vrot.slane %v1038_v47, 4 }
 0x366   : > { %v1113_v52 = vrot.slane %v1057_v48, 4  ;;  %v1112_v55 = vsel %vm775_vm3, %v1111_v53, %v1057_v48 }
 0x367   : > { %v1118_v58 = vperm.slane %v1112_v55, %v2197_v32  ;;  %v1640_v55 = vld [vmem:[#allocation7] sm:$0xff] }
 0x368   : > { %v1114_v54 = vsel %vm775_vm3, %v1095_v46, %v1113_v52 }
 0x369   : > { %v1122_v56 = vperm.slane %v1114_v54, %v2197_v32  ;;  %v1123_v1 = vrot.slane %v1118_v58, 4  ;;  %v1641_v54 = vld [vmem:[#allocation7 + $0x8] sm:$0xff] }
 0x36a   : > { %1256 = vmatpush.bf16.msra.mxu3 %v1641_v54 }
 0x36b   : > { %v1097_v49 = vpop.f32.mrf.mxu2  ;;  %v1135_v62 = vrot.slane %v1122_v56, 4 }
 0x36c   : > { %v1040_v50 = vpop.f32.mrf.mxu3 }
 0x36d   : > { %v1059_v51 = vpop.f32.mrf.mxu0 }
 0x36e   : > { %1257 = vmatpush.bf16.msra.mxu3 %v1640_v55 }
 0x377   : > { %v1076_v59 = vpop.f32.mrf.mxu1 }
 0x378   : > { %v1099_v60 = vrot.slane %v1076_v59, 4  ;;  %v1102_v61 = vsel %vm775_vm3, %v1076_v59, %v1101_v57 }
 0x379   : > { %v1110_v63 = vperm.slane %v1102_v61, %v2197_v32 }
 0x37a   : > { %v1100_v0 = vsel %vm775_vm3, %v1099_v60, %v1038_v47 }
 0x37b   : > { %v1106_v3 = vperm.slane %v1100_v0, %v2197_v32  ;;  %v1136_v4 = vsel %vm775_vm3, %v1135_v62, %v1110_v63  ;;  %v1137_v5 = vrot.slane %v1110_v63, 4  ;;  %v1748_v62 = vld [vmem:[%s2400_s8] ss:$0 sm:$0xff] }
 0x37c   : > { %v1142_v6 = vperm.slane %v1136_v4, %v2203_v42 }
 0x37d   : > { %v1124_v7 = vsel %vm775_vm3, %v1123_v1, %v1106_v3  ;;  %v1125_v8 = vrot.slane %v1106_v3, 4  ;;  %v1138_v9 = vsel %vm775_vm3, %v1122_v56, %v1137_v5  ;;  %v1968_v5 = vmov 32.0  }
 0x37e   : > { %v1130_v10 = vperm.slane %v1124_v7, %v2203_v42  ;;  %v1146_v11 = vperm.slane %v1138_v9, %v2203_v42  ;;  %v1151_v15 = vrot.slane %v1142_v6, 4  ;;  %1771 = vrcp.f32 %v1968_v5 }
 0x37f   : > { %v1126_v12 = vsel %vm775_vm3, %v1118_v58, %v1125_v8  ;;  %v1078_v13 = vpop.f32.mrf.mxu1 }
 0x380   : > { %v1134_v14 = vperm.slane %v1126_v12, %v2203_v42  ;;  %v1153_v16 = vrot.slane %v1146_v11, 4  ;;  %v1147_v17 = vrot.slane %v1130_v10, 4  ;;  %v1152_v24 = vsel %vm775_vm3, 0.0, %v1151_v15 }
 0x382   : > { %v1149_v18 = vrot.slane %v1134_v14, 4  ;;  %v1154_v19 = vsel %vm775_vm3, 0.0, %v1153_v16  ;;  %v1166_v20 = vsel %vm775_vm3, %v1153_v16, %v1142_v6  ;;  %v1148_v30 = vsel %vm775_vm3, 0.0, %v1147_v17  ;;  %v1642_v17 = vld [vmem:[#allocation9] sm:$0xff] }
 0x383   : > { %v1170_v21 = vperm.slane %v1166_v20, %v2197_v32  ;;  %v1171_v22 = vrot.slane %v1154_v19, 4 }
 0x384   : > { %v1150_v23 = vsel %vm775_vm3, 0.0, %v1149_v18  ;;  %v1155_v25 = vsel %vm775_vm3, %v1149_v18, %v1130_v10  ;;  %v1772_v6 = vpop.eup %1771  ;;  %v1647_v18 = vld [vmem:[%s2405_s13 + $0x18] sm:$0xff] }
 0x385   : > { %v1172_v26 = vsel %vm775_vm3, %v1171_v22, %v1152_v24  ;;  %v1159_v27 = vperm.slane %v1155_v25, %v2197_v32  ;;  %v1160_v28 = vrot.slane %v1150_v23, 4  ;;  %v1191_v29 = vrot.slane %v1170_v21, 4  ;;  %1386 = vmatpush.bf16.msrb.mxu1 %v1647_v18 }
 0x386   : > { %v1176_v31 = vperm.slane %v1172_v26, %v2197_v32  ;;  %v1268_v7 = vmul.f32 32.0, %v1772_v6  ;;  %vm1272_vm7 = vweird.f32 %v1772_v6 }
 0x387   : > { %v1161_v33 = vsel %vm775_vm3, %v1160_v28, %v1148_v30  ;;  %v1179_v34 = vrot.slane %v1159_v27, 4 }
 0x388   : > { %v1165_v35 = vperm.slane %v1161_v33, %v2197_v32  ;;  %v1192_v36 = vsel %vm775_vm3, %v1176_v31, %v1191_v29  ;;  %v1189_v37 = vrot.slane %v1176_v31, 4  ;;  %v1269_v8 = vsub.f32 1.0, %v1268_v7  ;;  %v1749_v29 = vld [vmem:[%s2401_s9] ss:$0 sm:$0xff] }
 0x389   : > { %v1200_v38 = vperm.slane %v1192_v36, %v2203_v42  ;;  %v1750_v31 = vld [vmem:[%s2402_s10] ss:$0 sm:$0xff] }
 0x38a   : > { %v1180_v39 = vsel %vm775_vm3, %v1165_v35, %v1179_v34  ;;  %v1177_v40 = vrot.slane %v1165_v35, 4  ;;  %v1190_v41 = vsel %vm775_vm3, %v1189_v37, %v1170_v21  ;;  %v1270_v9 = vmul.f32 %v1772_v6, %v1269_v8  ;;  %v1646_v21 = vld [vmem:[%s2405_s13 + $0x10] sm:$0xff]  ;;  %v1645_v37 = vld [vmem:[%s2405_s13 + $0x8] sm:$0xff] }
 0x38b   : > { %v1188_v43 = vperm.slane %v1180_v39, %v2203_v42  ;;  %v1205_v44 = vrot.slane %v1200_v38, 4  ;;  %v1196_v45 = vperm.slane %v1190_v41, %v2203_v42  ;;  %1387 = vmatpush.bf16.msrb.mxu1 %v1646_v21  ;;  %v1751_v39 = vld [vmem:[%s2404_s12] ss:$0 sm:$0xff] }
 0x38c   : > { %v1178_v46 = vsel %vm775_vm3, %v1177_v40, %v1159_v27  ;;  %v1271_v10 = vadd.f32 %v1772_v6, %v1270_v9 }
 0x38d   : > { %v1206_v47 = vsel %vm775_vm3, %v1205_v44, %v1188_v43  ;;  %v1207_v32 = vrot.slane %v1188_v43, 4  ;;  %v1184_v48 = vperm.slane %v1178_v46, %v2203_v42  ;;  %v1201_v49 = vrot.slane %v1196_v45, 4  ;;  %v1752_v46 = vld [vmem:[%s2406_s14] ss:$0 sm:$0xff] }
 0x38e   : > { %1214 = vrot.lane.b32.xlu2 %v1206_v47, %s1965_s1  ;;  %v1273_v11 = vsel %vm1272_vm7, %v1772_v6, %v1271_v10 }
 0x38f   : > { %v1208_v50 = vsel %vm775_vm3, %v1200_v38, %v1207_v32  ;;  %v1203_v51 = vrot.slane %v1184_v48, 4  ;;  %v1202_v52 = vsel %vm775_vm3, %v1201_v49, %v1184_v48  ;;  %1388 = vmatpush.bf16.msrb.mxu1 %v1645_v37  ;;  %v1644_v38 = vld [vmem:[%s2405_s13] sm:$0xff] }
 0x390   : > { %1218 = vrot.lane.b32.xlu1 %v1208_v50, %s1966_s22 }
 0x391   : > { %v1204_v53 = vsel %vm775_vm3, %v1196_v45, %v1203_v51 }
 0x392   : > { %1210 = vrot.lane.b32.xlu0 %v1204_v53, %s1967_s23 }
 0x393   : > { %1389 = vmatpush.bf16.msrb.mxu1 %v1644_v38 }
 0x3e8   : > { %v1215_v56 = vpop.permute.xlu2 %1214 }
 0x402   : > { %v1219_v58 = vpop.permute.xlu1 %1218 }
 0x404   : > { %v1211_v42 = vpop.permute.xlu0 %1210 }
 0x405   : > { %v1221_v57 = vsel %vm897_vm2, %v1202_v52, %v1211_v42 }
 0x406   : > { %v1223_v59 = vsel %vm1222_vm5, %v1221_v57, %v1215_v56 }
 0x407   : > { %v1225_v60 = vsel %vm1224_vm6, %v1223_v59, %v1219_v58 }
 0x408   : > { %v1226_v61 = vpack.c.bf16 %v1225_v60, %v1225_v60 }
 0x40a   : > { %1603 = vmatmul.msk.bf16.vlgmr.msra.gmra.mxu3 %vm635_vm0, %v1226_v61 }
 0x48d   : > { %v1259_v63 = vpop.f32.mrf.mxu3 }
 0x48e   : > { %v1260_v0 = vadd.f32 %v1748_v62, %v1259_v63 }
 0x490   : > { %v1263_v1 = vadd.f32 %v1260_v0, %v2166_v2  ;;  %v1643_v2 = vld [vmem:[#allocation9 + $0x8] sm:$0xff]  ;;  %v1753_v0 = vld [vmem:[%s2445_s15] ss:$0 sm:$0xff] }
 0x491   : > { %1333 = vmatpush.bf16.msrb.mxu0 %v1643_v2 }
 0x492   : > { %v1264_v3 = vsel %vm635_vm0, %v1263_v1, 0.0 }
 0x493   : > { %1265 = vadd.xlane.f32.xlu0 %v1264_v3 }
 0x495   : > { %v1261_v4 = vpop.f32.mrf.mxu3  ;;  %1334 = vmatpush.bf16.msrb.mxu0 %v1642_v17 }
 0x496   : > { %v1754_v4 = vld [vmem:[%s2449_s24] ss:$0 sm:$0xff] }
 0x506   : > { %v1266_v12 = vpop.xlane.xlu0 %1265 }
 0x507   : > { %v1274_v13 = vmul.f32 %v1273_v11, %v1266_v12 }
 0x509   : > { %v1275_v14 = vsub.f32 %v1263_v1, %v1274_v13 }
 0x50b   : > { %v1276_v15 = vmul.f32 %v1275_v14, %v1275_v14 }
 0x50d   : > { %v1277_v16 = vsel %vm635_vm0, %v1276_v15, 0.0 }
 0x50e   : > { %1278 = vadd.xlane.f32.xlu1 %v1277_v16 }
 0x581   : > { %v1279_v19 = vpop.xlane.xlu1 %1278 }
 0x582   : > { %v1280_v20 = vmul.f32 %v1279_v19, %v1273_v11 }
 0x584   : > { %v1281_v22 = vadd.f32 1e-05, %v1280_v20 }
 0x586   : > { %1773 = vrsqrt.f32 %v1281_v22  ;;  %vm1288_vm9 = vweird.f32 %v1281_v22 }
 0x58c   : > { %v1774_v23 = vpop.eup %1773 }
 0x58d   : > { %v1283_v24 = vmul.f32 %v1774_v23, %v1281_v22  ;;  %vm1289_vm8 = vweird.f32 %v1774_v23 }
 0x58e   : > { %vm1290_vm10 = vmor %vm1288_vm9, %vm1289_vm8 }
 0x58f   : > { %v1284_v25 = vmul.f32 %v1774_v23, %v1283_v24 }
 0x591   : > { %v1285_v26 = vmul.f32 0.5, %v1284_v25 }
 0x593   : > { %v1286_v27 = vsub.f32 1.5, %v1285_v26 }
 0x595   : > { %v1287_v28 = vmul.f32 %v1774_v23, %v1286_v27 }
 0x597   : > { %v1291_v30 = vsel %vm1290_vm10, %v1774_v23, %v1287_v28 }
 0x598   : > { %v1292_v33 = vmul.f32 %v1291_v30, %v1275_v14 }
 0x59a   : > { %v1297_v34 = vmul.f32 %v1749_v29, %v1292_v33 }
 0x59c   : > { %v1302_v35 = vadd.f32 %v1750_v31, %v1297_v34 }
 0x59e   : > { %v1303_v36 = vpack.c.bf16 %v1302_v35, %v1302_v35 }
 0x5a0   : > { %1612 = vmatmul.msk.bf16.vlgmr.msrb.gmra.mxu0 %vm635_vm0, %v1303_v36 }
 0x61d   : > { %v1336_v40 = vpop.f32.mrf.mxu0 }
 0x61e   : > { %v1337_v41 = vadd.f32 %v1751_v39, %v1336_v40 }
 0x620   : > { %v1340_v43 = vmax.f32 %v1337_v41, 0.0 }
 0x622   : > { %v1341_v44 = vpack.c.bf16 %v1340_v43, %v1340_v43 }
 0x624   : > { %1629 = vmatmul.msk.bf16.vlgmr.msrb.gmra.mxu1 %vm1378_vm11, %v1341_v44 }
 0x625   : > { %v1338_v45 = vpop.f32.mrf.mxu0 }
 0x6a1   : > { %v1391_v47 = vpop.f32.mrf.mxu1 }
 0x6a2   : > { %v1392_v32 = vadd.f32 %v1752_v46, %v1391_v47 }
 0x6a4   : > { %v1395_v48 = vadd.f32 %v1392_v32, %v1302_v35 }
 0x6a6   : > { %v1396_v49 = vsel %vm635_vm0, %v1395_v48, 0.0 }
 0x6a7   : > { %1397 = vadd.xlane.f32.xlu2 %v1396_v49 }
 0x6a9   : > { %v1393_v50 = vpop.f32.mrf.mxu1 }
 0x71a   : > { %v1398_v51 = vpop.xlane.xlu2 %1397 }
 0x71b   : > { %v1399_v52 = vmul.f32 %v1398_v51, %v1273_v11 }
 0x71d   : > { %v1400_v53 = vsub.f32 %v1395_v48, %v1399_v52 }
 0x71f   : > { %v1401_v54 = vmul.f32 %v1400_v53, %v1400_v53 }
 0x721   : > { %v1402_v55 = vsel %vm635_vm0, %v1401_v54, 0.0 }
 0x722   : > { %1403 = vadd.xlane.f32.xlu0 %v1402_v55 }
 0x795   : > { %v1404_v42 = vpop.xlane.xlu0 %1403 }
 0x796   : > { %v1405_v56 = vmul.f32 %v1404_v42, %v1273_v11 }
 0x798   : > { %v1406_v57 = vadd.f32 1e-05, %v1405_v56 }
 0x79a   : > { %1775 = vrsqrt.f32 %v1406_v57  ;;  %vm1413_vm13 = vweird.f32 %v1406_v57 }
 0x7a0   : > { %v1776_v58 = vpop.eup %1775 }
 0x7a1   : > { %v1408_v59 = vmul.f32 %v1776_v58, %v1406_v57  ;;  %vm1414_vm12 = vweird.f32 %v1776_v58 }
 0x7a2   : > { %vm1415_vm14 = vmor %vm1413_vm13, %vm1414_vm12 }
 0x7a3   : > { %v1409_v60 = vmul.f32 %v1776_v58, %v1408_v59 }
 0x7a5   : > { %v1410_v61 = vmul.f32 0.5, %v1409_v60 }
 0x7a7   : > { %v1411_v62 = vsub.f32 1.5, %v1410_v61 }
 0x7a9   : > { %v1412_v63 = vmul.f32 %v1776_v58, %v1411_v62 }
 0x7ab   : > { %v1416_v1 = vsel %vm1415_vm14, %v1776_v58, %v1412_v63 }
 0x7ac   : > { %v1417_v3 = vmul.f32 %v1416_v1, %v1400_v53 }
 0x7ae   : > { %v1422_v5 = vmul.f32 %v1753_v0, %v1417_v3 }
 0x7b0   : > { %v1427_v6 = vadd.f32 %v1754_v4, %v1422_v5 }
 0x7b2   : > { %1428 = vst.msk [vmem:[%s603_s19] sm:$0xff] %vm635_vm0, %v1427_v6 }
 0x7b3   : > { %1894 = shalt.err (!%p1891_p9)
}
 0x7b4   : > { %1660 = dma.vmem_to_hbm [thread:$0]  (%p2099_p4), %s1444_s27, 128, %s1446_s2, %s1430_s28  }
 0x7b5 PF: > { %s2450_s0 = sld [smem:[#allocation17_spill]] }
 0x7b6   : > { %s2451_s29 = sld [smem:[#allocation14_spill]] }
 0x7bb   : > { %p1682_p10 = scmp.ge.s32.totalorder %s2450_s0, 2 }
 0x7bc   : > { %s1457_s23 = sand.u32 1, %s2451_s29  }
 0x7bd   : > { %p1673_p11 = pnand %p1682_p10, %p2106_p8  ;;  %s1458_s24 = scalar_lea.sflag [#allocation6], %s1457_s23 }
 0x7bf   : > { %p1674_p12 = pneg %p1673_p11 }
 0x7c1   : > { %1928 = dma.done.wait (%p1674_p12), %s1458_s24, 128  }
 0x7c2   : > { %1930 = vsyncadd (%p1674_p12), %s1458_s24, 4294967168  ;;  %s32_s29 = sadd.s32 1, %s2450_s0   ;;  %s2453_s19 = sld [smem:[#allocation15_spill]] }
 0x7c3   : > { %p29_p13 = scmp.ge.s32.totalorder %s32_s29, 4   ;;  %s2454_s26 = sld [smem:[#allocation21_spill]] }
 0x7c4   : > { %s2455_s27 = sld [smem:[#allocation16_spill]]  ;;  %s2457_s24 = smov %s1937_s25 }
 0x7c5   : > { %s2456_s28 = sld [smem:[#allocation18_spill]]  ;;  %31 = sbr.rel (!%p29_p13) target bundleno = 14 (0xe), region = 147 }
 0x7c8   : > { %s2458_s25 = smov %s2453_s19 }
 0x7ca   :  { %1464 = vsyncpa [#allocation5], 1 }
 0x7cb   :  { %1466 = vsyncpa [#allocation5 + $0x1], 1 }
 0x7cc   :  { %1467 = vsyncpa [#allocation8], 1 }
 0x7cd   :  { %1468 = vsyncpa [#allocation6], 1 }
 0x7ce   :  { %1470 = vsyncpa [#allocation6 + $0x1], 1 }

// kernel: tpu_custom_call.1
= control target key start
LH: loop header
LB: loop body
LE: loop exit
PB: predicated region body
PF: predicated region fallthrough
CT: control target
= control target key end

     0   :  { %s2392_s0 = inlined_call_operand.vmem [shape: f32[2,8,32], index: 0, kind: input, shape index: {}]   ;;  %s2393_s1 = inlined_call_operand.vmem [shape: bf16[32,32], index: 1, kind: input, shape index: {}]   ;;  %s2394_s2 = inlined_call_operand.vmem [shape: bf16[32,32], index: 2, kind: input, shape index: {}]   ;;  %s2395_s3 = inlined_call_operand.hbm [shape: bf16[32,32], index: 3, kind: input, shape index: {}]   ;;  %s2396_s4 = inlined_call_operand.vmem [shape: f32[1,32], index: 4, kind: input, shape index: {}]   ;;  %s2397_s5 = inlined_call_operand.vmem [shape: f32[1,32], index: 5, kind: input, shape index: {}]   ;;  %s2398_s6 = inlined_call_operand.vmem [shape: f32[1,32], index: 6, kind: input, shape index: {}]   ;;  %s2399_s7 = inlined_call_operand.hbm [shape: bf16[32,32], index: 7, kind: input, shape index: {}]   ;;  %s2400_s8 = inlined_call_operand.vmem [shape: f32[1,32], index: 8, kind: input, shape index: {}]   ;;  %s2401_s9 = inlined_call_operand.vmem [shape: f32[1,32], index: 9, kind: input, shape index: {}]   ;;  %s2402_s10 = inlined_call_operand.vmem [shape: f32[1,32], index: 10, kind: input, shape index: {}]   ;;  %s2403_s11 = inlined_call_operand.hbm [shape: bf16[32,64], index: 11, kind: input, shape index: {}]   ;;  %s2404_s12 = inlined_call_operand.vmem [shape: f32[1,64], index: 12, kind: input, shape index: {}]   ;;  %s2405_s13 = inlined_call_operand.vmem [shape: bf16[64,32], index: 13, kind: input, shape index: {}]   ;;  %s2406_s14 = inlined_call_operand.vmem [shape: f32[1,32], index: 14, kind: input, shape index: {}]   ;;  %s2407_s15 = inlined_call_operand.vmem [shape: f32[1,32], index: 15, kind: input, shape index: {}]   ;;  %s2408_s16 = inlined_call_operand.vmem [shape: f32[1,32], index: 16, kind: input, shape index: {}]   ;;  %s2409_s17 = inlined_call_operand.hbm [shape: f32[2,8,32], index: 17, kind: output, shape index: {}]  }
   0x1   :  { %2421 = sst [smem:[#allocation22_spill]] %s2392_s0 }
   0x2   :  { %2422 = sst [smem:[#allocation23_spill]] %s2393_s1 }
   0x3   :  { %2423 = sst [smem:[#allocation24_spill]] %s2394_s2 }
   0x4   :  { %2424 = sst [smem:[#allocation25_spill]] %s2399_s7 }
   0x5   :  { %2425 = sst [smem:[#allocation26_spill]] %s2407_s15 }
   0x6   :  { %2426 = sst [smem:[#allocation27_spill]] %s2408_s16 }
   0x7   :  { %2427 = sst [smem:[#allocation28_spill]] %s2409_s17 }
   0x8   :  { %22 = vsyncpa [#allocation5], 0 }
   0x9   :  { %23 = vsyncpa [#allocation8], 0 }
   0xa   :  { %24 = vsyncpa [#allocation6], 0 }
   0xb   :  { %26 = vsyncpa [#allocation6 + $0x1], 0  ;;  %s2059_s24 = smov 0   ;;  %s2061_s25 = smov 0  }
   0xc   :  { %s2063_s26 = smov 0   ;;  %s2065_s27 = smov 0  }
   0xd   :  { %s2067_s28 = smov 0   ;;  %s2069_s29 = smov 0  }
   0xe LB: > { %2428 = sst [smem:[#allocation14_spill]] %s1933_s24  ;;  %s1547_s0 = sadd.s32 4294967295, %s1953_s29   ;;  %s1953_s29 = sphi %s2069_s29, %s32_s29   ;;  %s1949_s28 = sphi %s2067_s28, %s2456_s28   ;;  %s1945_s27 = sphi %s2065_s27, %s2455_s27   ;;  %s1941_s26 = sphi %s2063_s26, %s2454_s26   ;;  %s1937_s25 = sphi %s2061_s25, %s2458_s25   ;;  %s1933_s24 = sphi %s2059_s24, %s2457_s24  }
   0xf   : > { %2429 = sst [smem:[#allocation15_spill]] %s1941_s26  ;;  %s1548_s30 = sadd.s32 4294967294, %s1953_s29  }
  0x10   : > { %2430 = sst [smem:[#allocation16_spill]] %s1949_s28  ;;  %s44_s18 = sadd.s32 1, %s1949_s28 }
  0x11   : > { %2431 = sst [smem:[#allocation17_spill]] %s1953_s29  ;;  %s415_s19 = sadd.s32 1, %s1941_s26 }
  0x12   : > { %p46_p0 = scmp.ge.s32.totalorder %s44_s18, 2  ;;  %p425_p1 = scmp.ne.s32.totalorder %s1941_s26, %s1937_s25 }
  0x13   : > { %p426_p2 = scmp.eq.s32.totalorder %s1547_s0, 1  ;;  %p431_p3 = scmp.ne.s32.totalorder %s1937_s25, %s1933_s24 }
  0x14   : > { %s2460_s18 = smov (%p46_p0, %s44_s18), 0  ;;  %p432_p5 = scmp.eq.s32.totalorder %s1548_s30, 1 }
  0x15   : > { %2432 = sst [smem:[#allocation18_spill]] %s2460_s18  ;;  %p2099_p4 = por %p426_p2, %p425_p1 }
  0x16   : > { %s410_s20 = ssub.s32 %s1949_s28, %s2460_s18  ;;  %p1549_p6 = scmp.ge.s32.totalorder %s1953_s29, 1 }
  0x17   : > { %s2433_s1 = scalar_select %p2099_p4, 1, 0 }
  0x18   : > { %p413_p7 = scmp.eq.s32.totalorder %s410_s20, 0  ;;  %p2106_p8 = por %p432_p5, %p431_p3 }
  0x19   : > { %2434 = sst [smem:[#allocation19_spill]] %s2433_s1  ;;  %p439_p9 = scmp.lt.s32.totalorder %s1953_s29, 3 }
  0x1a   : > { %s2435_s21 = scalar_select %p2106_p8, 1, 0 }
  0x1b   : > { %s2112_s22 = scalar_select %p413_p7, %s1941_s26, %s415_s19  }
  0x1c   : > { %2436 = sst [smem:[#allocation20_spill]] %s2435_s21  ;;  %p2114_p10 = pnand %p1549_p6, %p439_p9 }
  0x1d   : > { %2437 = sst [smem:[#allocation21_spill]] %s2112_s22  ;;  %p2118_p11 = scmp.eq.s32.totalorder %s1547_s0, 0 }
  0x1e   : > { %p1662_p12 = pneg %p2114_p10  ;;  %s2440_s7 = sld [smem:[#allocation25_spill]] }
  0x1f   : > { %s1955_s28 = smov [#allocation7]   ;;  %s1956_s22 = smov 64  }
  0x20   : > { %p2129_p13 = pnand %p2118_p11, %p1662_p12  ;;  %s481_s0 = sshll.u32 %s1955_s28, 4  ;;  %s482_s0 = int_to_ptr.vmem [resolvable:$true] %s481_s0 }
  0x21   : > { %s1957_s26 = smov 4   ;;  %s456_s30 = sshll.u32 %s2395_s3, 4  ;;  %s457_s30 = int_to_ptr.hbm [resolvable:$true] %s456_s30 }
  0x22   : > { %s1958_s20 = smov [#allocation4]   ;;  %s502_s17 = sshll.u32 %s2403_s11, 4  ;;  %s503_s17 = int_to_ptr.hbm [resolvable:$true] %s502_s17 }
  0x23   : > { %s1959_s28 = smov [#allocation9]  }
  0x24   : > { %s479_s18 = sshll.u32 %s2440_s7, 4  ;;  %s458_s7 = sshll.u32 %s1958_s20, 4  ;;  %s480_s18 = int_to_ptr.hbm [resolvable:$true] %s479_s18  ;;  %s459_s7 = int_to_ptr.vmem [resolvable:$true] %s458_s7 }
  0x25   : > { %1668 = dma.hbm_to_vmem [thread:$0]  (!%p2129_p13), %s480_s18, 256, %s482_s0, [#allocation8], %s1956_s22, %s1956_s22, %s1957_s26  }
  0x26   : > { %1665 = dma.hbm_to_vmem [thread:$0]  (!%p2129_p13), %s457_s30, 256, %s459_s7, [#allocation5], %s1956_s22, %s1956_s22, %s1957_s26  }
  0x27   : > { %s504_s15 = sshll.u32 %s1959_s28, 4  ;;  %542 = sbr.rel (%p2114_p10) target bundleno = 1973 (0x7b5), region = 88  ;;  %s505_s15 = int_to_ptr.vmem [resolvable:$true] %s504_s15 }
  0x28   : > { %1671 = dma.hbm_to_vmem [thread:$0]  (!%p2129_p13), %s503_s17, 256, %s505_s15, [#allocation8], %s1956_s22, %s1956_s22, %s1957_s26  }
  0x2c   : > { %1920 = dma.done.wait (%p2118_p11), [#allocation5], 256  }
  0x2d   : > { %1922 = vsyncadd (%p2118_p11), [#allocation5], 4294967040 }
  0x2e   : > { %1924 = dma.done.wait (%p2118_p11), [#allocation8], 512  }
  0x2f   : > { %1926 = vsyncadd (%p2118_p11), [#allocation8], 4294966784  ;;  %p604_p0 = scmp.lt.s32.totalorder %s1945_s27, 1  ;;  %s2442_s26 = sld [smem:[#allocation22_spill]]  ;;  %vm635_vm0 = vcmask 261120   ;;  %vm687_vm1 = vcmask 60416  }
  0x30   : > { %s2443_s21 = sld [smem:[#allocation23_spill]]  ;;  %v1746_v6 = vld [vmem:[%s2397_s5] ss:$0 sm:$0xff]  ;;  %s1960_s16 = smov 112   ;;  %vm897_vm2 = vcmask 64512   ;;  %v1637_v19 = vld [vmem:[#allocation4 + $0x8] sm:$0xff] }
  0x31   : > { %s605_s7 = scalar_select %p604_p0, %s1945_s27, 1  ;;  %v1745_v9 = vld [vmem:[%s2396_s4] ss:$0 sm:$0xff]  ;;  %678 = vmatpush.bf16.msra.mxu1 %v1637_v19  ;;  %v1963_v26 = vmov 1983009808   ;;  %vm775_vm3 = vcmask 1047556  }
  0x32   : > { %s2444_s2 = sld [smem:[#allocation24_spill]]  ;;  %s1961_s17 = smov 104   ;;  %v1636_v20 = vld [vmem:[#allocation4] sm:$0xff]  ;;  %v780_v27 = vunpack.c.l.s4 %v1963_v26  ;;  %v1964_v35 = vmov 1934713408   ;;  %vm1025_vm4 = vcmask 1043456  }
  0x33   : > { %s1559_s15 = sshll.u32 %s605_s7, 3  ;;  %v804_v36 = vunpack.c.l.s4 %v1964_v35  ;;  %s1965_s1 = smov 16   ;;  %vm1222_vm5 = vcmask 130048   ;;  %vm1224_vm6 = vcmask 195584   ;;  %vm1378_vm11 = vcmask 523264  }
  0x34   : > { %v2197_v32 = vunpack.c.0.s8 %v780_v27  ;;  %s1966_s22 = smov 24   ;;  %s1967_s23 = smov 8  }
  0x35   : > { %s607_s29 = scalar_lea.vmem %s2442_s26, %s1559_s15  ;;  %s1962_s26 = smov 120   ;;  %679 = vmatpush.bf16.msra.mxu1 %v1636_v20  ;;  %v2203_v42 = vunpack.c.0.s8 %v804_v36 }
  0x36   : > { %v1639_v0 = vld [vmem:[%s2443_s21 + $0x8] sm:$0xff]  ;;  %v1638_v1 = vld [vmem:[%s2443_s21] sm:$0xff]  ;;  %s601_s0 = sand.u32 1, %s1937_s25   ;;  %s1631_s20 = sshll.u32 %s1945_s27, 3 }
  0x37   : > { %v2166_v2 = vld [vmem:[%s607_s29] sm:$0xff]  ;;  %756 = vmatpush.bf16.msra.mxu2 %v1639_v0  ;;  %s1558_s30 = sshll.u32 %s601_s0, 3  ;;  %s2445_s15 = sld [smem:[#allocation26_spill]] }
  0x38   : > { %v1635_v3 = vld [vmem:[%s2444_s2 + $0x8] sm:$0xff]  ;;  %v1634_v4 = vld [vmem:[%s2444_s2] sm:$0xff]  ;;  %v725_v5 = vpack.c.bf16 %v2166_v2, %v2166_v2  ;;  %s2449_s24 = sld [smem:[#allocation27_spill]]  ;;  %s603_s19 = scalar_lea.vmem [#allocation10], %s1558_s30 }
  0x39   : > { %645 = vmatpush.bf16.msra.mxu0 %v1635_v3  ;;  %s1443_s27 = sshll.u32 %s603_s19, 4  ;;  %s1430_s28 = scalar_lea.sflag [#allocation6], %s601_s0  ;;  %s1444_s27 = int_to_ptr.vmem [resolvable:$true] %s1443_s27 }
  0x3a   : > { %1577 = vmatmul.msk.bf16.vlgmr.msra.gmra.mxu1 %vm635_vm0, %v725_v5 }
  0x3b   : > { %757 = vmatpush.bf16.msra.mxu2 %v1638_v1 }
  0x3d   : > { %646 = vmatpush.bf16.msra.mxu0 %v1634_v4 }
  0x3e   : > { %1586 = vmatmul.msk.bf16.vlgmr.msra.gmra.mxu2 %vm635_vm0, %v725_v5 }
  0x40   : > { %1568 = vmatmul.msk.bf16.vlgmr.msra.gmra.mxu0 %vm635_vm0, %v725_v5 }
  0xbd   : > { %v648_v7 = vpop.f32.mrf.mxu0 }
  0xbe   : > { %v649_v8 = vadd.f32 %v1746_v6, %v648_v7 }
  0xc0   : > { %v685_v10 = vpack.c.bf16 %v649_v8, %v649_v8 }
  0xc1   : > { %v759_v11 = vpop.f32.mrf.mxu2 }
  0xc2   : > { %688 = vst.msk [vmem:[#allocation2] sm:$0xf] %vm687_vm1, %v685_v10  ;;  %702 = vrot.lane.b32.xlu2 %v685_v10, %s1960_s16  ;;  %v760_v12 = vadd.f32 %v1745_v9, %v759_v11 }
  0xc4   : > { %v763_v13 = vmul.f32 0.35355338, %v760_v12 }
  0xc5   : > { %v650_v14 = vpop.f32.mrf.mxu0 }
  0xc6   : > { %771 = vrot.lane.b32.xlu1 %v763_v13, %s1961_s17  ;;  %765 = vrot.lane.b32.xlu0 %v763_v13, %s1962_s26  ;;  %v777_v38 = vrot.slane %v763_v13, 4 }
  0xc9   : > { %v889_v15 = vld [vmem:[#allocation2] sm:$0xf]  ;;  %v761_v16 = vpop.f32.mrf.mxu2 }
  0xca   : > { %691 = vrot.lane.b32.xlu2 %v685_v10, %s1962_s26  ;;  %v902_v17 = vsel %vm897_vm2, %v889_v15, 0 }
  0xcb   : > { %911 = vmatpush.bf16.xpose.msra.mxu3 %v902_v17 }
  0xce   : > { %768 = vrot.lane.b32.xlu0 %v763_v13, %s1960_s16  ;;  %712 = vrot.lane.b32.xlu1 %v685_v10, %s1961_s17 }
 0x11c   : > { %v703_v18 = vpop.permute.xlu2 %702 }
 0x11d   : > { %706 = vst.msk [vmem:[#allocation2 + $0x8] sm:$0xf] %vm687_vm1, %v703_v18 }
 0x124   : > { %v692_v21 = vpop.permute.xlu2 %691  ;;  %v891_v22 = vld [vmem:[#allocation2 + $0x8] sm:$0xf] }
 0x125   : > { %695 = vst.msk [vmem:[#allocation2 + $0x4] sm:$0xf] %vm687_vm1, %v692_v21  ;;  %v940_v24 = vsel %vm897_vm2, %v891_v22, 0 }
 0x126   : > { %949 = vmatpush.bf16.xpose.msrb.mxu1 %v940_v24 }
 0x12c   : > { %v890_v23 = vld [vmem:[#allocation2 + $0x4] sm:$0xf] }
 0x12d   : > { %v921_v25 = vsel %vm897_vm2, %v890_v23, 0 }
 0x12e   : > { %930 = vmatpush.bf16.xpose.msrb.mxu0 %v921_v25 }
 0x138   : > { %v772_v28 = vpop.permute.xlu1 %771  ;;  %v766_v29 = vpop.permute.xlu0 %765 }
 0x139   : > { %v787_v30 = vrot.slane %v772_v28, 4  ;;  %v789_v31 = vrot.slane %v766_v29, 4 }
 0x13b   : > { %v790_v33 = vsel %vm775_vm3, %v772_v28, %v789_v31  ;;  %v788_v34 = vsel %vm775_vm3, %v787_v30, %v766_v29 }
 0x13c   : > { %v798_v37 = vperm.slane %v790_v33, %v2197_v32  ;;  %v794_v39 = vperm.slane %v788_v34, %v2197_v32 }
 0x13e   : > { %v811_v45 = vrot.slane %v798_v37, 4  ;;  %v799_v48 = vrot.slane %v794_v39, 4 }
 0x140   : > { %v769_v40 = vpop.permute.xlu0 %768  ;;  %v713_v41 = vpop.permute.xlu1 %712 }
 0x141   : > { %v774_v43 = vrot.slane %v769_v40, 4  ;;  %v778_v44 = vsel %vm775_vm3, %v769_v40, %v777_v38  ;;  %716 = vst.msk [vmem:[#allocation2 + $0xc] sm:$0xf] %vm687_vm1, %v713_v41 }
 0x142   : > { %v786_v46 = vperm.slane %v778_v44, %v2197_v32  ;;  %v681_v44 = vpop.f32.mrf.mxu1 }
 0x143   : > { %v776_v47 = vsel %vm775_vm3, %v774_v43, %v763_v13  ;;  %v1747_v43 = vld [vmem:[%s2398_s6] ss:$0 sm:$0xff] }
 0x144   : > { %v782_v49 = vperm.slane %v776_v47, %v2197_v32  ;;  %v812_v50 = vsel %vm775_vm3, %v811_v45, %v786_v46  ;;  %v813_v51 = vrot.slane %v786_v46, 4  ;;  %v682_v45 = vadd.f32 %v1747_v43, %v681_v44 }
 0x145   : > { %v818_v52 = vperm.slane %v812_v50, %v2203_v42 }
 0x146   : > { %v800_v53 = vsel %vm775_vm3, %v799_v48, %v782_v49  ;;  %v801_v54 = vrot.slane %v782_v49, 4  ;;  %v814_v55 = vsel %vm775_vm3, %v798_v37, %v813_v51  ;;  %v686_v46 = vpack.c.bf16 %v682_v45, %v682_v45 }
 0x147   : > { %v806_v56 = vperm.slane %v800_v53, %v2203_v42  ;;  %v822_v57 = vperm.slane %v814_v55, %v2203_v42  ;;  %v827_v61 = vrot.slane %v818_v52, 4 }
 0x148   : > { %v802_v58 = vsel %vm775_vm3, %v794_v39, %v801_v54  ;;  %v892_v59 = vld [vmem:[#allocation2 + $0xc] sm:$0xf]  ;;  %689 = vst.msk [vmem:[#allocation3] sm:$0xf] %vm687_vm1, %v686_v46 }
 0x149   : > { %v810_v60 = vperm.slane %v802_v58, %v2203_v42  ;;  %v829_v62 = vrot.slane %v822_v57, 4  ;;  %v959_v63 = vsel %vm897_vm2, %v892_v59, 0  ;;  %v823_v0 = vrot.slane %v806_v56, 4 }
 0x14a   : > { %968 = vmatpush.bf16.xpose.msrb.mxu2 %v959_v63  ;;  %v828_v8 = vsel %vm775_vm3, 0.0, %v827_v61  ;;  %v683_v47 = vpop.f32.mrf.mxu1 }
 0x14b   : > { %v825_v1 = vrot.slane %v810_v60, 4  ;;  %v830_v3 = vsel %vm775_vm3, 0.0, %v829_v62  ;;  %v842_v4 = vsel %vm775_vm3, %v829_v62, %v818_v52  ;;  %v824_v14 = vsel %vm775_vm3, 0.0, %v823_v0 }
 0x14c   : > { %v846_v5 = vperm.slane %v842_v4, %v2197_v32  ;;  %v847_v6 = vrot.slane %v830_v3, 4 }
 0x14d   : > { %v826_v7 = vsel %vm775_vm3, 0.0, %v825_v1  ;;  %v831_v9 = vsel %vm775_vm3, %v825_v1, %v806_v56 }
 0x14e   : > { %v835_v10 = vperm.slane %v831_v9, %v2197_v32  ;;  %v836_v11 = vrot.slane %v826_v7, 4  ;;  %v848_v12 = vsel %vm775_vm3, %v847_v6, %v828_v8  ;;  %v867_v13 = vrot.slane %v846_v5, 4 }
 0x14f   : > { %v852_v15 = vperm.slane %v848_v12, %v2197_v32  ;;  %v893_v48 = vld [vmem:[#allocation3] sm:$0xf] }
 0x150   : > { %v837_v16 = vsel %vm775_vm3, %v836_v11, %v824_v14  ;;  %v855_v17 = vrot.slane %v835_v10, 4  ;;  %v1027_v49 = vsel %vm1025_vm4, %v893_v48, 0 }
 0x151   : > { %v841_v18 = vperm.slane %v837_v16, %v2197_v32  ;;  %v868_v19 = vsel %vm775_vm3, %v852_v15, %v867_v13  ;;  %v865_v20 = vrot.slane %v852_v15, 4  ;;  %1036 = vmatpush.bf16.msrb.mxu3 %v1027_v49 }
 0x152   : > { %v876_v21 = vperm.slane %v868_v19, %v2203_v42 }
 0x153   : > { %v856_v22 = vsel %vm775_vm3, %v841_v18, %v855_v17  ;;  %v853_v23 = vrot.slane %v841_v18, 4  ;;  %v866_v24 = vsel %vm775_vm3, %v865_v20, %v846_v5 }
 0x154   : > { %v864_v25 = vperm.slane %v856_v22, %v2203_v42  ;;  %v881_v26 = vrot.slane %v876_v21, 4  ;;  %v872_v27 = vperm.slane %v866_v24, %v2203_v42 }
 0x155   : > { %v854_v28 = vsel %vm775_vm3, %v853_v23, %v835_v10 }
 0x156   : > { %v882_v29 = vsel %vm775_vm3, %v881_v26, %v864_v25  ;;  %v860_v30 = vperm.slane %v854_v28, %v2203_v42  ;;  %v877_v31 = vrot.slane %v872_v27, 4  ;;  %v883_v33 = vrot.slane %v864_v25, 4 }
 0x157   : > { %v887_v34 = vpack.c.bf16 %v882_v29, %v882_v29 }
 0x158   : > { %v878_v35 = vsel %vm775_vm3, %v877_v31, %v860_v30  ;;  %v879_v36 = vrot.slane %v860_v30, 4  ;;  %v884_v37 = vsel %vm775_vm3, %v876_v21, %v883_v33 }
 0x159   : > { %1589 = vmatmul.msk.bf16.vlgmr.msrb.gmra.mxu1 %vm897_vm2, %v887_v34  ;;  %v885_v38 = vpack.c.bf16 %v878_v35, %v878_v35  ;;  %v888_v39 = vpack.c.bf16 %v884_v37, %v884_v37 }
 0x15a   : > { %v880_v40 = vsel %vm775_vm3, %v872_v27, %v879_v36 }
 0x15b   : > { %1587 = vmatmul.msk.bf16.vlgmr.msra.gmra.mxu3 %vm897_vm2, %v885_v38  ;;  %1590 = vmatmul.msk.bf16.vlgmr.msrb.gmra.mxu2 %vm897_vm2, %v888_v39  ;;  %v886_v41 = vpack.c.bf16 %v880_v40, %v880_v40 }
 0x15d   : > { %1588 = vmatmul.msk.bf16.vlgmr.msrb.gmra.mxu0 %vm897_vm2, %v886_v41 }
 0x1d6   : > { %v951_v50 = vpop.f32.mrf.mxu1 }
 0x1d7   : > { %v980_v51 = vsel %vm897_vm2, %v951_v50, -inf }
 0x1d8   : > { %981 = vmax.xlane.f32.xlu2 %v980_v51 }
 0x1da   : > { %v932_v52 = vpop.f32.mrf.mxu0 }
 0x1db   : > { %v977_v56 = vsel %vm897_vm2, %v932_v52, -inf }
 0x1de   : > { %v913_v53 = vpop.f32.mrf.mxu3  ;;  %v953_v54 = vpop.f32.mrf.mxu1 }
 0x1df   : > { %v970_v55 = vpop.f32.mrf.mxu2  ;;  %v974_v57 = vsel %vm897_vm2, %v913_v53, -inf }
 0x1e0   : > { %978 = vmax.xlane.f32.xlu2 %v977_v56  ;;  %v983_v58 = vsel %vm897_vm2, %v970_v55, -inf  ;;  %975 = vmax.xlane.f32.xlu0 %v974_v57 }
 0x1e1   : > { %984 = vmax.xlane.f32.xlu1 %v983_v58 }
 0x1e2   : > { %v934_v59 = vpop.f32.mrf.mxu0 }
 0x1e6   : > { %v915_v60 = vpop.f32.mrf.mxu3 }
 0x1e7   : > { %v972_v61 = vpop.f32.mrf.mxu2 }
 0x1f4   : > { %717 = vrot.lane.b32.xlu0 %v686_v46, %s1961_s17 }
 0x1fc   : > { %697 = vrot.lane.b32.xlu0 %v686_v46, %s1962_s26  ;;  %s2446_s26 = sld [smem:[#allocation28_spill]] }
 0x202   : > { %s2447_s18 = smov %s2446_s26  ;;  %s1441_s29 = scalar_lea.hbm %s2446_s26, %s1631_s20 }
 0x203   : > { %s1445_s2 = sshll.u32 %s1441_s29, 4  ;;  %s1887_s30 = scalar_lea.hbm %s2447_s18, 16  ;;  %s1446_s2 = int_to_ptr.hbm [resolvable:$true] %s1445_s2 }
 0x204   : > { %s1881_s7 = sshra.s32 %s1446_s2, 4  ;;  %s1882_s7 = int_to_ptr.hbm [resolvable:$true] %s1881_s7 }
 0x205   : > { %s1883_s20 = scalar_lea.hbm %s1882_s7, 8  ;;  %p1888_p5 = scmp.lt.s32.totalorder %s1882_s7, %s2447_s18 }
 0x206   : > { %p1884_p1 = scmp.ne.s32.totalorder %s1882_s7, %s1883_s20  ;;  %p1889_p6 = scmp.lt.s32.totalorder %s1887_s30, %s1883_s20 }
 0x208   : > { %p1885_p2 = pnand %p1884_p1, %p2099_p4  ;;  %p1890_p7 = por %p1889_p6, %p1888_p5 }
 0x20a   : > { %p1886_p3 = pneg %p1885_p2 }
 0x20c   : > { %p1891_p9 = pnand %p1890_p7, %p1886_p3 }
 0x24b   : > { %v982_v62 = vpop.xlane.xlu2 %981 }
 0x24c   : > { %v988_v63 = vsub.f32 %v951_v50, %v982_v62 }
 0x24e   : > { %v994_v0 = vmul.f32 1.442695, %v988_v63 }
 0x250   : > { %1755 = vpow2.f32 %v994_v0 }
 0x253   : > { %v976_v1 = vpop.xlane.xlu0 %975  ;;  %v979_v3 = vpop.xlane.xlu2 %978 }
 0x254   : > { %v985_v4 = vpop.xlane.xlu1 %984  ;;  %v986_v5 = vsub.f32 %v913_v53, %v976_v1  ;;  %v987_v9 = vsub.f32 %v932_v52, %v979_v3 }
 0x255   : > { %v989_v6 = vsub.f32 %v970_v55, %v985_v4 }
 0x256   : > { %v1756_v7 = vpop.eup %1755  ;;  %v990_v8 = vmul.f32 1.442695, %v986_v5  ;;  %v992_v12 = vmul.f32 1.442695, %v987_v9 }
 0x257   : > { %v996_v10 = vmul.f32 1.442695, %v989_v6  ;;  %v1004_v11 = vsel %vm897_vm2, %v1756_v7, 0.0 }
 0x258   : > { %1005 = vadd.xlane.f32.xlu2 %v1004_v11 }
 0x259   : > { %1757 = vpow2.f32 %v996_v10 }
 0x25a   : > { %1759 = vpow2.f32 %v990_v8 }
 0x25b   : > { %1761 = vpow2.f32 %v992_v12 }
 0x25f   : > { %v1758_v13 = vpop.eup %1757 }
 0x260   : > { %v1760_v14 = vpop.eup %1759  ;;  %v1007_v15 = vsel %vm897_vm2, %v1758_v13, 0.0 }
 0x261   : > { %1008 = vadd.xlane.f32.xlu2 %v1007_v15  ;;  %v998_v16 = vsel %vm897_vm2, %v1760_v14, 0.0  ;;  %v1762_v17 = vpop.eup %1761 }
 0x262   : > { %999 = vadd.xlane.f32.xlu1 %v998_v16  ;;  %v1001_v19 = vsel %vm897_vm2, %v1762_v17, 0.0 }
 0x266   : > { %v718_v18 = vpop.permute.xlu0 %717 }
 0x267   : > { %721 = vst.msk [vmem:[#allocation3 + $0xc] sm:$0xf] %vm687_vm1, %v718_v18 }
 0x269   : > { %1002 = vadd.xlane.f32.xlu2 %v1001_v19 }
 0x26e   : > { %v698_v20 = vpop.permute.xlu0 %697  ;;  %v896_v21 = vld [vmem:[#allocation3 + $0xc] sm:$0xf] }
 0x26f   : > { %701 = vst.msk [vmem:[#allocation3 + $0x4] sm:$0xf] %vm687_vm1, %v698_v20  ;;  %v1084_v22 = vsel %vm1025_vm4, %v896_v21, 0 }
 0x270   : > { %1093 = vmatpush.bf16.msra.mxu2 %v1084_v22 }
 0x276   : > { %v894_v23 = vld [vmem:[#allocation3 + $0x4] sm:$0xf] }
 0x277   : > { %v1046_v24 = vsel %vm1025_vm4, %v894_v23, 0 }
 0x278   : > { %1055 = vmatpush.bf16.msra.mxu0 %v1046_v24 }
 0x27b   : > { %707 = vrot.lane.b32.xlu1 %v686_v46, %s1960_s16 }
 0x2cb   : > { %v1006_v25 = vpop.xlane.xlu2 %1005 }
 0x2d4   : > { %v1009_v26 = vpop.xlane.xlu2 %1008 }
 0x2d5   : > { %1763 = vrcp.f32 %v1009_v26  ;;  %v1000_v27 = vpop.xlane.xlu1 %999 }
 0x2d6   : > { %1765 = vrcp.f32 %v1000_v27 }
 0x2db   : > { %v1764_v28 = vpop.eup %1763 }
 0x2dc   : > { %v1766_v29 = vpop.eup %1765  ;;  %v1017_v30 = vmul.f32 %v1764_v28, %v1758_v13  ;;  %v1003_v31 = vpop.xlane.xlu2 %1002 }
 0x2dd   : > { %v1014_v33 = vmul.f32 %v1766_v29, %v1760_v14  ;;  %1767 = vrcp.f32 %v1003_v31 }
 0x2de   : > { %v1021_v34 = vpack.c.bf16 %v1017_v30, %v1017_v30  ;;  %1769 = vrcp.f32 %v1006_v25 }
 0x2df   : > { %v1018_v35 = vpack.c.bf16 %v1014_v33, %v1014_v33 }
 0x2e0   : > { %1594 = vmatmul.msk.bf16.vlgmr.msra.gmra.mxu2 %vm897_vm2, %v1021_v34 }
 0x2e1   : > { %1591 = vmatmul.msk.bf16.vlgmr.msrb.gmra.mxu3 %vm897_vm2, %v1018_v35 }
 0x2e3   : > { %v1768_v36 = vpop.eup %1767 }
 0x2e4   : > { %v1015_v37 = vmul.f32 %v1768_v36, %v1762_v17  ;;  %v1770_v40 = vpop.eup %1769 }
 0x2e5   : > { %v1016_v41 = vmul.f32 %v1770_v40, %v1756_v7 }
 0x2e6   : > { %v1019_v38 = vpack.c.bf16 %v1015_v37, %v1015_v37 }
 0x2e7   : > { %v1020_v45 = vpack.c.bf16 %v1016_v41, %v1016_v41 }
 0x2e8   : > { %1592 = vmatmul.msk.bf16.vlgmr.msra.gmra.mxu0 %vm897_vm2, %v1019_v38 }
 0x2ed   : > { %v708_v39 = vpop.permute.xlu1 %707 }
 0x2ee   : > { %711 = vst.msk [vmem:[#allocation3 + $0x8] sm:$0xf] %vm687_vm1, %v708_v39 }
 0x2f5   : > { %v895_v43 = vld [vmem:[#allocation3 + $0x8] sm:$0xf] }
 0x2f6   : > { %v1065_v44 = vsel %vm1025_vm4, %v895_v43, 0 }
 0x2f7   : > { %1074 = vmatpush.bf16.msra.mxu1 %v1065_v44 }
 0x2fa   : > { %1593 = vmatmul.msk.bf16.vlgmr.msra.gmra.mxu1 %vm897_vm2, %v1020_v45 }
 0x363   : > { %v1095_v46 = vpop.f32.mrf.mxu2 }
 0x364   : > { %v1038_v47 = vpop.f32.mrf.mxu3  ;;  %v1111_v53 = vrot.slane %v1095_v46, 4 }
 0x365   : > { %v1057_v48 = vpop.f32.mrf.mxu0  ;;  %v1101_v57 = vrot.slane %v1038_v47, 4 }
 0x366   : > { %v1113_v52 = vrot.slane %v1057_v48, 4  ;;  %v1112_v55 = vsel %vm775_vm3, %v1111_v53, %v1057_v48 }
 0x367   : > { %v1118_v58 = vperm.slane %v1112_v55, %v2197_v32  ;;  %v1640_v55 = vld [vmem:[#allocation7] sm:$0xff] }
 0x368   : > { %v1114_v54 = vsel %vm775_vm3, %v1095_v46, %v1113_v52 }
 0x369   : > { %v1122_v56 = vperm.slane %v1114_v54, %v2197_v32  ;;  %v1123_v1 = vrot.slane %v1118_v58, 4  ;;  %v1641_v54 = vld [vmem:[#allocation7 + $0x8] sm:$0xff] }
 0x36a   : > { %1256 = vmatpush.bf16.msra.mxu3 %v1641_v54 }
 0x36b   : > { %v1097_v49 = vpop.f32.mrf.mxu2  ;;  %v1135_v62 = vrot.slane %v1122_v56, 4 }
 0x36c   : > { %v1040_v50 = vpop.f32.mrf.mxu3 }
 0x36d   : > { %v1059_v51 = vpop.f32.mrf.mxu0 }
 0x36e   : > { %1257 = vmatpush.bf16.msra.mxu3 %v1640_v55 }
 0x377   : > { %v1076_v59 = vpop.f32.mrf.mxu1 }
 0x378   : > { %v1099_v60 = vrot.slane %v1076_v59, 4  ;;  %v1102_v61 = vsel %vm775_vm3, %v1076_v59, %v1101_v57 }
 0x379   : > { %v1110_v63 = vperm.slane %v1102_v61, %v2197_v32 }
 0x37a   : > { %v1100_v0 = vsel %vm775_vm3, %v1099_v60, %v1038_v47 }
 0x37b   : > { %v1106_v3 = vperm.slane %v1100_v0, %v2197_v32  ;;  %v1136_v4 = vsel %vm775_vm3, %v1135_v62, %v1110_v63  ;;  %v1137_v5 = vrot.slane %v1110_v63, 4  ;;  %v1748_v62 = vld [vmem:[%s2400_s8] ss:$0 sm:$0xff] }
 0x37c   : > { %v1142_v6 = vperm.slane %v1136_v4, %v2203_v42 }
 0x37d   : > { %v1124_v7 = vsel %vm775_vm3, %v1123_v1, %v1106_v3  ;;  %v1125_v8 = vrot.slane %v1106_v3, 4  ;;  %v1138_v9 = vsel %vm775_vm3, %v1122_v56, %v1137_v5  ;;  %v1968_v5 = vmov 32.0  }
 0x37e   : > { %v1130_v10 = vperm.slane %v1124_v7, %v2203_v42  ;;  %v1146_v11 = vperm.slane %v1138_v9, %v2203_v42  ;;  %v1151_v15 = vrot.slane %v1142_v6, 4  ;;  %1771 = vrcp.f32 %v1968_v5 }
 0x37f   : > { %v1126_v12 = vsel %vm775_vm3, %v1118_v58, %v1125_v8  ;;  %v1078_v13 = vpop.f32.mrf.mxu1 }
 0x380   : > { %v1134_v14 = vperm.slane %v1126_v12, %v2203_v42  ;;  %v1153_v16 = vrot.slane %v1146_v11, 4  ;;  %v1147_v17 = vrot.slane %v1130_v10, 4  ;;  %v1152_v24 = vsel %vm775_vm3, 0.0, %v1151_v15 }
 0x382   : > { %v1149_v18 = vrot.slane %v1134_v14, 4  ;;  %v1154_v19 = vsel %vm775_vm3, 0.0, %v1153_v16  ;;  %v1166_v20 = vsel %vm775_vm3, %v1153_v16, %v1142_v6  ;;  %v1148_v30 = vsel %vm775_vm3, 0.0, %v1147_v17  ;;  %v1642_v17 = vld [vmem:[#allocation9] sm:$0xff] }
 0x383   : > { %v1170_v21 = vperm.slane %v1166_v20, %v2197_v32  ;;  %v1171_v22 = vrot.slane %v1154_v19, 4 }
 0x384   : > { %v1150_v23 = vsel %vm775_vm3, 0.0, %v1149_v18  ;;  %v1155_v25 = vsel %vm775_vm3, %v1149_v18, %v1130_v10  ;;  %v1772_v6 = vpop.eup %1771  ;;  %v1647_v18 = vld [vmem:[%s2405_s13 + $0x18] sm:$0xff] }
 0x385   : > { %v1172_v26 = vsel %vm775_vm3, %v1171_v22, %v1152_v24  ;;  %v1159_v27 = vperm.slane %v1155_v25, %v2197_v32  ;;  %v1160_v28 = vrot.slane %v1150_v23, 4  ;;  %v1191_v29 = vrot.slane %v1170_v21, 4  ;;  %1386 = vmatpush.bf16.msrb.mxu1 %v1647_v18 }
 0x386   : > { %v1176_v31 = vperm.slane %v1172_v26, %v2197_v32  ;;  %v1268_v7 = vmul.f32 32.0, %v1772_v6  ;;  %vm1272_vm7 = vweird.f32 %v1772_v6 }
 0x387   : > { %v1161_v33 = vsel %vm775_vm3, %v1160_v28, %v1148_v30  ;;  %v1179_v34 = vrot.slane %v1159_v27, 4 }
 0x388   : > { %v1165_v35 = vperm.slane %v1161_v33, %v2197_v32  ;;  %v1192_v36 = vsel %vm775_vm3, %v1176_v31, %v1191_v29  ;;  %v1189_v37 = vrot.slane %v1176_v31, 4  ;;  %v1269_v8 = vsub.f32 1.0, %v1268_v7  ;;  %v1749_v29 = vld [vmem:[%s2401_s9] ss:$0 sm:$0xff] }
 0x389   : > { %v1200_v38 = vperm.slane %v1192_v36, %v2203_v42  ;;  %v1750_v31 = vld [vmem:[%s2402_s10] ss:$0 sm:$0xff] }
 0x38a   : > { %v1180_v39 = vsel %vm775_vm3, %v1165_v35, %v1179_v34  ;;  %v1177_v40 = vrot.slane %v1165_v35, 4  ;;  %v1190_v41 = vsel %vm775_vm3, %v1189_v37, %v1170_v21  ;;  %v1270_v9 = vmul.f32 %v1772_v6, %v1269_v8  ;;  %v1646_v21 = vld [vmem:[%s2405_s13 + $0x10] sm:$0xff]  ;;  %v1645_v37 = vld [vmem:[%s2405_s13 + $0x8] sm:$0xff] }
 0x38b   : > { %v1188_v43 = vperm.slane %v1180_v39, %v2203_v42  ;;  %v1205_v44 = vrot.slane %v1200_v38, 4  ;;  %v1196_v45 = vperm.slane %v1190_v41, %v2203_v42  ;;  %1387 = vmatpush.bf16.msrb.mxu1 %v1646_v21  ;;  %v1751_v39 = vld [vmem:[%s2404_s12] ss:$0 sm:$0xff] }
 0x38c   : > { %v1178_v46 = vsel %vm775_vm3, %v1177_v40, %v1159_v27  ;;  %v1271_v10 = vadd.f32 %v1772_v6, %v1270_v9 }
 0x38d   : > { %v1206_v47 = vsel %vm775_vm3, %v1205_v44, %v1188_v43  ;;  %v1207_v32 = vrot.slane %v1188_v43, 4  ;;  %v1184_v48 = vperm.slane %v1178_v46, %v2203_v42  ;;  %v1201_v49 = vrot.slane %v1196_v45, 4  ;;  %v1752_v46 = vld [vmem:[%s2406_s14] ss:$0 sm:$0xff] }
 0x38e   : > { %1214 = vrot.lane.b32.xlu2 %v1206_v47, %s1965_s1  ;;  %v1273_v11 = vsel %vm1272_vm7, %v1772_v6, %v1271_v10 }
 0x38f   : > { %v1208_v50 = vsel %vm775_vm3, %v1200_v38, %v1207_v32  ;;  %v1203_v51 = vrot.slane %v1184_v48, 4  ;;  %v1202_v52 = vsel %vm775_vm3, %v1201_v49, %v1184_v48  ;;  %1388 = vmatpush.bf16.msrb.mxu1 %v1645_v37  ;;  %v1644_v38 = vld [vmem:[%s2405_s13] sm:$0xff] }
 0x390   : > { %1218 = vrot.lane.b32.xlu1 %v1208_v50, %s1966_s22 }
 0x391   : > { %v1204_v53 = vsel %vm775_vm3, %v1196_v45, %v1203_v51 }
 0x392   : > { %1210 = vrot.lane.b32.xlu0 %v1204_v53, %s1967_s23 }
 0x393   : > { %1389 = vmatpush.bf16.msrb.mxu1 %v1644_v38 }
 0x3e8   : > { %v1215_v56 = vpop.permute.xlu2 %1214 }
 0x402   : > { %v1219_v58 = vpop.permute.xlu1 %1218 }
 0x404   : > { %v1211_v42 = vpop.permute.xlu0 %1210 }
 0x405   : > { %v1221_v57 = vsel %vm897_vm2, %v1202_v52, %v1211_v42 }
 0x406   : > { %v1223_v59 = vsel %vm1222_vm5, %v1221_v57, %v1215_v56 }
 0x407   : > { %v1225_v60 = vsel %vm1224_vm6, %v1223_v59, %v1219_v58 }
 0x408   : > { %v1226_v61 = vpack.c.bf16 %v1225_v60, %v1225_v60 }
 0x40a   : > { %1603 = vmatmul.msk.bf16.vlgmr.msra.gmra.mxu3 %vm635_vm0, %v1226_v61 }
 0x48d   : > { %v1259_v63 = vpop.f32.mrf.mxu3 }
 0x48e   : > { %v1260_v0 = vadd.f32 %v1748_v62, %v1259_v63 }
 0x490   : > { %v1263_v1 = vadd.f32 %v1260_v0, %v2166_v2  ;;  %v1643_v2 = vld [vmem:[#allocation9 + $0x8] sm:$0xff]  ;;  %v1753_v0 = vld [vmem:[%s2445_s15] ss:$0 sm:$0xff] }
 0x491   : > { %1333 = vmatpush.bf16.msrb.mxu0 %v1643_v2 }
 0x492   : > { %v1264_v3 = vsel %vm635_vm0, %v1263_v1, 0.0 }
 0x493   : > { %1265 = vadd.xlane.f32.xlu0 %v1264_v3 }
 0x495   : > { %v1261_v4 = vpop.f32.mrf.mxu3  ;;  %1334 = vmatpush.bf16.msrb.mxu0 %v1642_v17 }
 0x496   : > { %v1754_v4 = vld [vmem:[%s2449_s24] ss:$0 sm:$0xff] }
 0x506   : > { %v1266_v12 = vpop.xlane.xlu0 %1265 }
 0x507   : > { %v1274_v13 = vmul.f32 %v1273_v11, %v1266_v12 }
 0x509   : > { %v1275_v14 = vsub.f32 %v1263_v1, %v1274_v13 }
 0x50b   : > { %v1276_v15 = vmul.f32 %v1275_v14, %v1275_v14 }
 0x50d   : > { %v1277_v16 = vsel %vm635_vm0, %v1276_v15, 0.0 }
 0x50e   : > { %1278 = vadd.xlane.f32.xlu1 %v1277_v16 }
 0x581   : > { %v1279_v19 = vpop.xlane.xlu1 %1278 }
 0x582   : > { %v1280_v20 = vmul.f32 %v1279_v19, %v1273_v11 }
 0x584   : > { %v1281_v22 = vadd.f32 1e-05, %v1280_v20 }
 0x586   : > { %1773 = vrsqrt.f32 %v1281_v22  ;;  %vm1288_vm9 = vweird.f32 %v1281_v22 }
 0x58c   : > { %v1774_v23 = vpop.eup %1773 }
 0x58d   : > { %v1283_v24 = vmul.f32 %v1774_v23, %v1281_v22  ;;  %vm1289_vm8 = vweird.f32 %v1774_v23 }
 0x58e   : > { %vm1290_vm10 = vmor %vm1288_vm9, %vm1289_vm8 }
 0x58f   : > { %v1284_v25 = vmul.f32 %v1774_v23, %v1283_v24 }
 0x591   : > { %v1285_v26 = vmul.f32 0.5, %v1284_v25 }
 0x593   : > { %v1286_v27 = vsub.f32 1.5, %v1285_v26 }
 0x595   : > { %v1287_v28 = vmul.f32 %v1774_v23, %v1286_v27 }
 0x597   : > { %v1291_v30 = vsel %vm1290_vm10, %v1774_v23, %v1287_v28 }
 0x598   : > { %v1292_v33 = vmul.f32 %v1291_v30, %v1275_v14 }
 0x59a   : > { %v1297_v34 = vmul.f32 %v1749_v29, %v1292_v33 }
 0x59c   : > { %v1302_v35 = vadd.f32 %v1750_v31, %v1297_v34 }
 0x59e   : > { %v1303_v36 = vpack.c.bf16 %v1302_v35, %v1302_v35 }
 0x5a0   : > { %1612 = vmatmul.msk.bf16.vlgmr.msrb.gmra.mxu0 %vm635_vm0, %v1303_v36 }
 0x61d   : > { %v1336_v40 = vpop.f32.mrf.mxu0 }
 0x61e   : > { %v1337_v41 = vadd.f32 %v1751_v39, %v1336_v40 }
 0x620   : > { %v1340_v43 = vmax.f32 %v1337_v41, 0.0 }
 0x622   : > { %v1341_v44 = vpack.c.bf16 %v1340_v43, %v1340_v43 }
 0x624   : > { %1629 = vmatmul.msk.bf16.vlgmr.msrb.gmra.mxu1 %vm1378_vm11, %v1341_v44 }
 0x625   : > { %v1338_v45 = vpop.f32.mrf.mxu0 }
 0x6a1   : > { %v1391_v47 = vpop.f32.mrf.mxu1 }
 0x6a2   : > { %v1392_v32 = vadd.f32 %v1752_v46, %v1391_v47 }
 0x6a4   : > { %v1395_v48 = vadd.f32 %v1392_v32, %v1302_v35 }
 0x6a6   : > { %v1396_v49 = vsel %vm635_vm0, %v1395_v48, 0.0 }
 0x6a7   : > { %1397 = vadd.xlane.f32.xlu2 %v1396_v49 }
 0x6a9   : > { %v1393_v50 = vpop.f32.mrf.mxu1 }
 0x71a   : > { %v1398_v51 = vpop.xlane.xlu2 %1397 }
 0x71b   : > { %v1399_v52 = vmul.f32 %v1398_v51, %v1273_v11 }
 0x71d   : > { %v1400_v53 = vsub.f32 %v1395_v48, %v1399_v52 }
 0x71f   : > { %v1401_v54 = vmul.f32 %v1400_v53, %v1400_v53 }
 0x721   : > { %v1402_v55 = vsel %vm635_vm0, %v1401_v54, 0.0 }
 0x722   : > { %1403 = vadd.xlane.f32.xlu0 %v1402_v55 }
 0x795   : > { %v1404_v42 = vpop.xlane.xlu0 %1403 }
 0x796   : > { %v1405_v56 = vmul.f32 %v1404_v42, %v1273_v11 }
 0x798   : > { %v1406_v57 = vadd.f32 1e-05, %v1405_v56 }
 0x79a   : > { %1775 = vrsqrt.f32 %v1406_v57  ;;  %vm1413_vm13 = vweird.f32 %v1406_v57 }
 0x7a0   : > { %v1776_v58 = vpop.eup %1775 }
 0x7a1   : > { %v1408_v59 = vmul.f32 %v1776_v58, %v1406_v57  ;;  %vm1414_vm12 = vweird.f32 %v1776_v58 }
 0x7a2   : > { %vm1415_vm14 = vmor %vm1413_vm13, %vm1414_vm12 }
 0x7a3   : > { %v1409_v60 = vmul.f32 %v1776_v58, %v1408_v59 }
 0x7a5   : > { %v1410_v61 = vmul.f32 0.5, %v1409_v60 }
 0x7a7   : > { %v1411_v62 = vsub.f32 1.5, %v1410_v61 }
 0x7a9   : > { %v1412_v63 = vmul.f32 %v1776_v58, %v1411_v62 }
 0x7ab   : > { %v1416_v1 = vsel %vm1415_vm14, %v1776_v58, %v1412_v63 }
 0x7ac   : > { %v1417_v3 = vmul.f32 %v1416_v1, %v1400_v53 }
 0x7ae   : > { %v1422_v5 = vmul.f32 %v1753_v0, %v1417_v3 }
 0x7b0   : > { %v1427_v6 = vadd.f32 %v1754_v4, %v1422_v5 }
 0x7b2   : > { %1428 = vst.msk [vmem:[%s603_s19] sm:$0xff] %vm635_vm0, %v1427_v6 }
 0x7b3   : > { %1894 = shalt.err (!%p1891_p9)
}
 0x7b4   : > { %1660 = dma.vmem_to_hbm [thread:$0]  (%p2099_p4), %s1444_s27, 128, %s1446_s2, %s1430_s28  }
 0x7b5 PF: > { %s2450_s0 = sld [smem:[#allocation17_spill]] }
 0x7b6   : > { %s2451_s29 = sld [smem:[#allocation14_spill]] }
 0x7bb   : > { %p1682_p10 = scmp.ge.s32.totalorder %s2450_s0, 2 }
 0x7bc   : > { %s1457_s23 = sand.u32 1, %s2451_s29  }
 0x7bd   : > { %p1673_p11 = pnand %p1682_p10, %p2106_p8  ;;  %s1458_s24 = scalar_lea.sflag [#allocation6], %s1457_s23 }
 0x7bf   : > { %p1674_p12 = pneg %p1673_p11 }
 0x7c1   : > { %1928 = dma.done.wait (%p1674_p12), %s1458_s24, 128  }
 0x7c2   : > { %1930 = vsyncadd (%p1674_p12), %s1458_s24, 4294967168  ;;  %s32_s29 = sadd.s32 1, %s2450_s0   ;;  %s2453_s19 = sld [smem:[#allocation15_spill]] }
 0x7c3   : > { %p29_p13 = scmp.ge.s32.totalorder %s32_s29, 4   ;;  %s2454_s26 = sld [smem:[#allocation21_spill]] }
 0x7c4   : > { %s2455_s27 = sld [smem:[#allocation16_spill]]  ;;  %s2457_s24 = smov %s1937_s25 }
 0x7c5   : > { %s2456_s28 = sld [smem:[#allocation18_spill]]  ;;  %31 = sbr.rel (!%p29_p13) target bundleno = 14 (0xe), region = 147 }
 0x7c8   : > { %s2458_s25 = smov %s2453_s19 }
 0x7ca   :  { %1464 = vsyncpa [#allocation5], 1 }
 0x7cb   :  { %1466 = vsyncpa [#allocation5 + $0x1], 1 }
 0x7cc   :  { %1467 = vsyncpa [#allocation8], 1 }
 0x7cd   :  { %1468 = vsyncpa [#allocation6], 1 }
 0x7ce   :  { %1470 = vsyncpa [#allocation6 + $0x1], 1 }

</bundles_post_ra>
